<compile_context>
chip_gen: v5e
topology: v5e:2x2
jax: 0.10.0
libtpu: 0.0.40
codegen_flags: <defaults>
</compile_context>

<pallas_src>
import functools

import jax
import jax.numpy as jnp
from jax.experimental import pallas as pl
from jax.experimental.pallas import tpu as pltpu


def _round_up(x, m):
    return (x + m - 1) // m * m


# ---------------------------------------------------------------------------
# Stage 1: embed support+query with one stacked MXU matmul, then project the
# two halves through W1s / W1q.  Single grid point (tiny matmuls).
# ---------------------------------------------------------------------------
def _project_kernel(x_ref, wf_ref, bf_ref, w1s_ref, w1q_ref, a_ref, b_ref,
                    *, s_rows):
    emb = jnp.maximum(
        jnp.dot(x_ref[...], wf_ref[...], preferred_element_type=jnp.float32)
        + bf_ref[...], 0.0)                                 # (S_pad+Q_pad, H)
    s_emb = emb[:s_rows]                                    # (S_pad, H)
    q_emb = emb[s_rows:]                                    # (Q_pad, H)
    a_ref[...] = jnp.dot(
        s_emb, w1s_ref[...],
        preferred_element_type=jnp.float32).astype(a_ref.dtype)
    b_ref[...] = jnp.dot(
        q_emb, w1q_ref[...],
        preferred_element_type=jnp.float32).astype(b_ref.dtype)


# ---------------------------------------------------------------------------
# Stage 2: pairwise relation scores on a (TQ, TS) output tile.
#   score[q, s] = sum_h relu(b[q, h] + a_t[h, s] + b1[h]) * w2[h] + b2
# Per-h VPU accumulation: no (Q, S, H) intermediate, no cross-lane reduce.
# ---------------------------------------------------------------------------
def _pairwise_kernel(b_ref, a_t_ref, b1_ref, w2_ref, b2_ref, out_ref):
    b = b_ref[...]                      # (TQ, H)  q on sublanes, h on lanes
    a_t = a_t_ref[...]                  # (H, TS)  h on sublanes, s on lanes
    tq = b.shape[0]
    ts = a_t.shape[1]
    hdim = a_t.shape[0]

    acc = jnp.zeros((tq, ts), jnp.float32)
    # TODO(synk): for very large H switch to a chunked accumulation to bound
    # the unrolled trace; per-h unroll is ideal for typical RelationNet H.
    for h in range(hdim):
        pair = b[:, h:h + 1] + a_t[h:h + 1, :] + b1_ref[h]   # (TQ, TS) on VPU
        acc = acc + jnp.maximum(pair, 0.0) * w2_ref[h]
    out_ref[...] = (acc + b2_ref[0]).astype(out_ref.dtype)


def relationnet_forward(support_set, query_set, labels, params):
    # `labels` is accepted for API parity with the torch module but is unused
    # in the forward pass (exactly as in the reference implementation).
    del labels
    S, D = support_set.shape
    Q, _ = query_set.shape
    H = params["wf"].shape[1]

    # ---- tile sizes / padding -------------------------------------------
    TS = 128                                  # lane-dense output tiles
    TQ = min(128, _round_up(Q, 8))
    S_pad = _round_up(S, TS)
    Q_pad = _round_up(Q, TQ)

    f32 = jnp.float32
    wf = params["wf"].astype(f32)             # (D, H)
    bf = params["bf"].astype(f32)             # (1, H)
    w1s = params["w1s"].astype(f32)           # (H, H)
    w1q = params["w1q"].astype(f32)           # (H, H)
    b1 = params["b1"].reshape(H).astype(f32)  # (H,)  -> SMEM
    w2 = params["w2t"].reshape(H).astype(f32) # (H,)  -> SMEM
    b2 = params["b2"].reshape(1).astype(f32)  # (1,)  -> SMEM

    # Stack (padded) support and query rows so F runs as ONE MXU matmul.
    supp_p = jnp.zeros((S_pad, D), f32).at[:S].set(support_set.astype(f32))
    query_p = jnp.zeros((Q_pad, D), f32).at[:Q].set(query_set.astype(f32))
    x = jnp.concatenate([supp_p, query_p], axis=0)        # (S_pad+Q_pad, D)

    def full_spec(shape):
        return pl.BlockSpec(shape, lambda i: (0,) * len(shape))

    # ---- stage 1: projections -------------------------------------------
    a, b = pl.pallas_call(
        functools.partial(_project_kernel, s_rows=S_pad),
        out_shape=(jax.ShapeDtypeStruct((S_pad, H), f32),
                   jax.ShapeDtypeStruct((Q_pad, H), f32)),
        grid=(1,),
        in_specs=[full_spec(t.shape) for t in (x, wf, bf, w1s, w1q)],
        out_specs=(full_spec((S_pad, H)), full_spec((Q_pad, H))),
        compiler_params=pltpu.CompilerParams(
            dimension_semantics=("arbitrary",)),
    )(x, wf, bf, w1s, w1q)

    # Tiny XLA transpose between the two calls so the support index lands on
    # lanes in the pairwise stage (avoids an in-kernel XLU transpose on a
    # narrow tile).
    a_t = a.T                                              # (H, S_pad)

    # ---- stage 2: pairwise scores ----------------------------------------
    smem = pl.BlockSpec(memory_space=pltpu.MemorySpace.SMEM)
    scores = pl.pallas_call(
        _pairwise_kernel,
        out_shape=jax.ShapeDtypeStruct((Q_pad, S_pad), f32),
        grid=(Q_pad // TQ, S_pad // TS),
        in_specs=[
            pl.BlockSpec((TQ, H), lambda i, j: (i, 0)),    # query-side strip
            pl.BlockSpec((H, TS), lambda i, j: (0, j)),    # support-side strip
            smem, smem, smem,                              # b1, w2, b2
        ],
        out_specs=pl.BlockSpec((TQ, TS), lambda i, j: (i, j)),
        compiler_params=pltpu.CompilerParams(
            dimension_semantics=("parallel", "parallel")),
    )(b, a_t, b1, w2, b2)

    return scores[:Q, :S]


def _reference_forward(support_set, query_set, params):
    # pure-JAX reference mirroring the PyTorch graph literally
    wf, bf = params["wf"], params["bf"][0]
    w1 = jnp.concatenate([params["w1s"], params["w1q"]], axis=0)  # (2H, H)
    b1 = params["b1"][0]
    w2 = params["w2t"][0][:, None]                                # (H, 1)
    b2 = params["b2"][0, 0]

    s_emb = jax.nn.relu(support_set @ wf + bf)        # (S, H)
    q_emb = jax.nn.relu(query_set @ wf + bf)          # (Q, H)
    S, H = s_emb.shape
    Q = q_emb.shape[0]
    comb = jnp.concatenate(
        [jnp.broadcast_to(s_emb[None, :, :], (Q, S, H)),
         jnp.broadcast_to(q_emb[:, None, :], (Q, S, H))], axis=2)  # (Q, S, 2H)
    h = jax.nn.relu(comb @ w1 + b1)                   # (Q, S, H)
    return (h @ w2)[..., 0] + b2                      # (Q, S)


if __name__ == "__main__":
    key = jax.random.PRNGKey(0)
    k = jax.random.split(key, 8)

    S, Q, D, H = 5, 8, 64, 32   # 5-way support, 8 queries, 64-d in, 32-d hidden

    support_set = jax.random.normal(k[0], (S, D), dtype=jnp.float32)
    query_set = jax.random.normal(k[1], (Q, D), dtype=jnp.float32)
    labels = jnp.arange(S, dtype=jnp.int32)   # unused by forward

    params = {
        "wf":  jax.random.normal(k[2], (D, H), dtype=jnp.float32) * 0.1,
        "bf":  jax.random.normal(k[3], (1, H), dtype=jnp.float32) * 0.1,
        "w1s": jax.random.normal(k[4], (H, H), dtype=jnp.float32) * 0.1,
        "w1q": jax.random.normal(k[5], (H, H), dtype=jnp.float32) * 0.1,
        "b1":  jax.random.normal(k[6], (1, H), dtype=jnp.float32) * 0.1,
        "w2t": jax.random.normal(k[7], (1, H), dtype=jnp.float32) * 0.1,
        "b2":  jnp.zeros((1, 1), dtype=jnp.float32),
    }

    fwd = jax.jit(relationnet_forward)
    out = jax.block_until_ready(fwd(support_set, query_set, labels, params))

    ref = _reference_forward(support_set, query_set, params)
    assert out.shape == (Q, S), out.shape
    assert jnp.allclose(out, ref, atol=1e-4, rtol=1e-4), \
        f"max err {jnp.max(jnp.abs(out - ref))}"

    print("KERNEL_OK")
</pallas_src>

<mosaic_0001>
module attributes {stable_mosaic.version = 11 : i64} {
  func.func @_project_kernel(%arg0: i32, %arg1: memref<136x64xf32, #tpu.memory_space<vmem>>, %arg2: memref<64x32xf32, #tpu.memory_space<vmem>>, %arg3: memref<1x32xf32, #tpu.memory_space<vmem>>, %arg4: memref<32x32xf32, #tpu.memory_space<vmem>>, %arg5: memref<32x32xf32, #tpu.memory_space<vmem>>, %arg6: memref<128x32xf32, #tpu.memory_space<vmem>>, %arg7: memref<8x32xf32, #tpu.memory_space<vmem>>) attributes {dimension_semantics = [#tpu.dimension_semantics<arbitrary>], iteration_bounds = array<i64: 1>, scalar_prefetch = 0 : i64, scratch_operands = 0 : i64, tpu.core_type = #tpu.core_type<tc>, window_params = [{pipeline_mode = #tpu.pipeline_mode<synchronous>, transform_indices = @transform_0, window_bounds = array<i64: 136, 64>}, {pipeline_mode = #tpu.pipeline_mode<synchronous>, transform_indices = @transform_1, window_bounds = array<i64: 64, 32>}, {pipeline_mode = #tpu.pipeline_mode<synchronous>, transform_indices = @transform_2, window_bounds = array<i64: 1, 32>}, {pipeline_mode = #tpu.pipeline_mode<synchronous>, transform_indices = @transform_3, window_bounds = array<i64: 32, 32>}, {pipeline_mode = #tpu.pipeline_mode<synchronous>, transform_indices = @transform_4, window_bounds = array<i64: 32, 32>}, {pipeline_mode = #tpu.pipeline_mode<synchronous>, transform_indices = @transform_5, window_bounds = array<i64: 128, 32>}, {pipeline_mode = #tpu.pipeline_mode<synchronous>, transform_indices = @transform_6, window_bounds = array<i64: 8, 32>}]} {
    %c0 = arith.constant 0 : index
    %c0_0 = arith.constant 0 : index
    %0 = vector.load %arg1[%c0, %c0_0] : memref<136x64xf32, #tpu.memory_space<vmem>>, vector<136x64xf32>
    %c0_1 = arith.constant 0 : index
    %c0_2 = arith.constant 0 : index
    %1 = vector.load %arg2[%c0_1, %c0_2] : memref<64x32xf32, #tpu.memory_space<vmem>>, vector<64x32xf32>
    %cst = arith.constant dense<0.000000e+00> : vector<136x32xf32>
    %2 = tpu.matmul %0, %1, %cst {dimension_numbers = #tpu.dot_dimension_numbers<[1], [0], [0], [1], [0, 0, 1, 1], [], []>} : vector<136x64xf32>, vector<64x32xf32>, vector<136x32xf32> -> vector<136x32xf32>
    %c0_3 = arith.constant 0 : index
    %c0_4 = arith.constant 0 : index
    %3 = vector.load %arg3[%c0_3, %c0_4] : memref<1x32xf32, #tpu.memory_space<vmem>>, vector<1x32xf32>
    %4 = vector.broadcast %3 : vector<1x32xf32> to vector<136x32xf32>
    %5 = arith.addf %2, %4 : vector<136x32xf32>
    %cst_5 = arith.constant 0.000000e+00 : f32
    %6 = vector.broadcast %cst_5 : f32 to vector<136x32xf32>
    %7 = arith.maximumf %5, %6 : vector<136x32xf32>
    %8 = vector.extract_strided_slice %7 {offsets = [0, 0], sizes = [128, 32], strides = [1, 1]} : vector<136x32xf32> to vector<128x32xf32>
    %9 = vector.extract_strided_slice %7 {offsets = [128, 0], sizes = [8, 32], strides = [1, 1]} : vector<136x32xf32> to vector<8x32xf32>
    %c0_6 = arith.constant 0 : index
    %c0_7 = arith.constant 0 : index
    %10 = vector.load %arg4[%c0_6, %c0_7] : memref<32x32xf32, #tpu.memory_space<vmem>>, vector<32x32xf32>
    %cst_8 = arith.constant dense<0.000000e+00> : vector<128x32xf32>
    %11 = tpu.matmul %8, %10, %cst_8 {dimension_numbers = #tpu.dot_dimension_numbers<[1], [0], [0], [1], [0, 0, 1, 1], [], []>} : vector<128x32xf32>, vector<32x32xf32>, vector<128x32xf32> -> vector<128x32xf32>
    %c0_9 = arith.constant 0 : index
    %c0_10 = arith.constant 0 : index
    %12 = vector.load %arg6[%c0_9, %c0_10] : memref<128x32xf32, #tpu.memory_space<vmem>>, vector<128x32xf32>
    tpu.vector_store %arg6[%c0_9, %c0_10], %11 {strides = array<i32>} : memref<128x32xf32, #tpu.memory_space<vmem>>, vector<128x32xf32>,
    %c0_11 = arith.constant 0 : index
    %c0_12 = arith.constant 0 : index
    %13 = vector.load %arg5[%c0_11, %c0_12] : memref<32x32xf32, #tpu.memory_space<vmem>>, vector<32x32xf32>
    %cst_13 = arith.constant dense<0.000000e+00> : vector<8x32xf32>
    %14 = tpu.matmul %9, %13, %cst_13 {dimension_numbers = #tpu.dot_dimension_numbers<[1], [0], [0], [1], [0, 0, 1, 1], [], []>} : vector<8x32xf32>, vector<32x32xf32>, vector<8x32xf32> -> vector<8x32xf32>
    %c0_14 = arith.constant 0 : index
    %c0_15 = arith.constant 0 : index
    %15 = vector.load %arg7[%c0_14, %c0_15] : memref<8x32xf32, #tpu.memory_space<vmem>>, vector<8x32xf32>
    tpu.vector_store %arg7[%c0_14, %c0_15], %14 {strides = array<i32>} : memref<8x32xf32, #tpu.memory_space<vmem>>, vector<8x32xf32>,
    return
  }
  func.func @transform_0(%arg0: i32) -> (i32, i32) {
    %c0_i32 = arith.constant 0 : i32
    %c0_i32_0 = arith.constant 0 : i32
    %c0_i32_1 = arith.constant 0 : i32
    return %c0_i32, %c0_i32_0 : i32, i32
  }
  func.func @transform_1(%arg0: i32) -> (i32, i32) {
    %c0_i32 = arith.constant 0 : i32
    %c0_i32_0 = arith.constant 0 : i32
    %c0_i32_1 = arith.constant 0 : i32
    return %c0_i32, %c0_i32_0 : i32, i32
  }
  func.func @transform_2(%arg0: i32) -> (i32, i32) {
    %c0_i32 = arith.constant 0 : i32
    %c0_i32_0 = arith.constant 0 : i32
    %c0_i32_1 = arith.constant 0 : i32
    return %c0_i32, %c0_i32_0 : i32, i32
  }
  func.func @transform_3(%arg0: i32) -> (i32, i32) {
    %c0_i32 = arith.constant 0 : i32
    %c0_i32_0 = arith.constant 0 : i32
    %c0_i32_1 = arith.constant 0 : i32
    return %c0_i32, %c0_i32_0 : i32, i32
  }
  func.func @transform_4(%arg0: i32) -> (i32, i32) {
    %c0_i32 = arith.constant 0 : i32
    %c0_i32_0 = arith.constant 0 : i32
    %c0_i32_1 = arith.constant 0 : i32
    return %c0_i32, %c0_i32_0 : i32, i32
  }
  func.func @transform_5(%arg0: i32) -> (i32, i32) {
    %c0_i32 = arith.constant 0 : i32
    %c0_i32_0 = arith.constant 0 : i32
    %c0_i32_1 = arith.constant 0 : i32
    return %c0_i32, %c0_i32_0 : i32, i32
  }
  func.func @transform_6(%arg0: i32) -> (i32, i32) {
    %c0_i32 = arith.constant 0 : i32
    %c0_i32_0 = arith.constant 0 : i32
    %c0_i32_1 = arith.constant 0 : i32
    return %c0_i32, %c0_i32_0 : i32, i32
  }
}

module attributes {stable_mosaic.version = 11 : i64} {
  func.func @_pairwise_kernel(%arg0: i32, %arg1: i32, %arg2: memref<8x32xf32, #tpu.memory_space<vmem>>, %arg3: memref<32x128xf32, #tpu.memory_space<vmem>>, %arg4: memref<32xf32, #tpu.memory_space<smem>>, %arg5: memref<32xf32, #tpu.memory_space<smem>>, %arg6: memref<1xf32, #tpu.memory_space<smem>>, %arg7: memref<8x128xf32, #tpu.memory_space<vmem>>) attributes {dimension_semantics = [#tpu.dimension_semantics<parallel>, #tpu.dimension_semantics<parallel>], iteration_bounds = array<i64: 1, 1>, scalar_prefetch = 0 : i64, scratch_operands = 0 : i64, tpu.core_type = #tpu.core_type<tc>, window_params = [{transform_indices = @transform_0, window_bounds = array<i64: 8, 32>}, {transform_indices = @transform_1, window_bounds = array<i64: 32, 128>}, {transform_indices = @transform_2, window_bounds = array<i64: 32>}, {transform_indices = @transform_3, window_bounds = array<i64: 32>}, {transform_indices = @transform_4, window_bounds = array<i64: 1>}, {transform_indices = @transform_5, window_bounds = array<i64: 8, 128>}]} {
    %c0 = arith.constant 0 : index
    %c0_0 = arith.constant 0 : index
    %0 = vector.load %arg2[%c0, %c0_0] : memref<8x32xf32, #tpu.memory_space<vmem>>, vector<8x32xf32>
    %c0_1 = arith.constant 0 : index
    %c0_2 = arith.constant 0 : index
    %1 = vector.load %arg3[%c0_1, %c0_2] : memref<32x128xf32, #tpu.memory_space<vmem>>, vector<32x128xf32>
    %cst = arith.constant 0.000000e+00 : f32
    %2 = vector.broadcast %cst : f32 to vector<8x128xf32>
    %3 = vector.extract_strided_slice %0 {offsets = [0, 0], sizes = [8, 1], strides = [1, 1]} : vector<8x32xf32> to vector<8x1xf32>
    %4 = vector.extract_strided_slice %1 {offsets = [0, 0], sizes = [1, 128], strides = [1, 1]} : vector<32x128xf32> to vector<1x128xf32>
    %5 = vector.broadcast %3 : vector<8x1xf32> to vector<8x128xf32>
    %6 = vector.broadcast %4 : vector<1x128xf32> to vector<8x128xf32>
    %7 = arith.addf %5, %6 : vector<8x128xf32>
    %c0_3 = arith.constant 0 : index
    %8 = memref.load %arg4[%c0_3] : memref<32xf32, #tpu.memory_space<smem>>
    %9 = vector.broadcast %8 : f32 to vector<8x128xf32>
    %10 = arith.addf %7, %9 : vector<8x128xf32>
    %cst_4 = arith.constant 0.000000e+00 : f32
    %11 = vector.broadcast %cst_4 : f32 to vector<8x128xf32>
    %12 = arith.maximumf %10, %11 : vector<8x128xf32>
    %c0_5 = arith.constant 0 : index
    %13 = memref.load %arg5[%c0_5] : memref<32xf32, #tpu.memory_space<smem>>
    %14 = vector.broadcast %13 : f32 to vector<8x128xf32>
    %15 = arith.mulf %12, %14 : vector<8x128xf32>
    %16 = arith.addf %2, %15 : vector<8x128xf32>
    %17 = vector.extract_strided_slice %0 {offsets = [0, 1], sizes = [8, 1], strides = [1, 1]} : vector<8x32xf32> to vector<8x1xf32>
    %18 = vector.extract_strided_slice %1 {offsets = [1, 0], sizes = [1, 128], strides = [1, 1]} : vector<32x128xf32> to vector<1x128xf32>
    %19 = vector.broadcast %17 : vector<8x1xf32> to vector<8x128xf32>
    %20 = vector.broadcast %18 : vector<1x128xf32> to vector<8x128xf32>
    %21 = arith.addf %19, %20 : vector<8x128xf32>
    %c1 = arith.constant 1 : index
    %22 = memref.load %arg4[%c1] : memref<32xf32, #tpu.memory_space<smem>>
    %23 = vector.broadcast %22 : f32 to vector<8x128xf32>
    %24 = arith.addf %21, %23 : vector<8x128xf32>
    %cst_6 = arith.constant 0.000000e+00 : f32
    %25 = vector.broadcast %cst_6 : f32 to vector<8x128xf32>
    %26 = arith.maximumf %24, %25 : vector<8x128xf32>
    %c1_7 = arith.constant 1 : index
    %27 = memref.load %arg5[%c1_7] : memref<32xf32, #tpu.memory_space<smem>>
    %28 = vector.broadcast %27 : f32 to vector<8x128xf32>
    %29 = arith.mulf %26, %28 : vector<8x128xf32>
    %30 = arith.addf %16, %29 : vector<8x128xf32>
    %31 = vector.extract_strided_slice %0 {offsets = [0, 2], sizes = [8, 1], strides = [1, 1]} : vector<8x32xf32> to vector<8x1xf32>
    %32 = vector.extract_strided_slice %1 {offsets = [2, 0], sizes = [1, 128], strides = [1, 1]} : vector<32x128xf32> to vector<1x128xf32>
    %33 = vector.broadcast %31 : vector<8x1xf32> to vector<8x128xf32>
    %34 = vector.broadcast %32 : vector<1x128xf32> to vector<8x128xf32>
    %35 = arith.addf %33, %34 : vector<8x128xf32>
    %c2 = arith.constant 2 : index
    %36 = memref.load %arg4[%c2] : memref<32xf32, #tpu.memory_space<smem>>
    %37 = vector.broadcast %36 : f32 to vector<8x128xf32>
    %38 = arith.addf %35, %37 : vector<8x128xf32>
    %cst_8 = arith.constant 0.000000e+00 : f32
    %39 = vector.broadcast %cst_8 : f32 to vector<8x128xf32>
    %40 = arith.maximumf %38, %39 : vector<8x128xf32>
    %c2_9 = arith.constant 2 : index
    %41 = memref.load %arg5[%c2_9] : memref<32xf32, #tpu.memory_space<smem>>
    %42 = vector.broadcast %41 : f32 to vector<8x128xf32>
    %43 = arith.mulf %40, %42 : vector<8x128xf32>
    %44 = arith.addf %30, %43 : vector<8x128xf32>
    %45 = vector.extract_strided_slice %0 {offsets = [0, 3], sizes = [8, 1], strides = [1, 1]} : vector<8x32xf32> to vector<8x1xf32>
    %46 = vector.extract_strided_slice %1 {offsets = [3, 0], sizes = [1, 128], strides = [1, 1]} : vector<32x128xf32> to vector<1x128xf32>
    %47 = vector.broadcast %45 : vector<8x1xf32> to vector<8x128xf32>
    %48 = vector.broadcast %46 : vector<1x128xf32> to vector<8x128xf32>
    %49 = arith.addf %47, %48 : vector<8x128xf32>
    %c3 = arith.constant 3 : index
    %50 = memref.load %arg4[%c3] : memref<32xf32, #tpu.memory_space<smem>>
    %51 = vector.broadcast %50 : f32 to vector<8x128xf32>
    %52 = arith.addf %49, %51 : vector<8x128xf32>
    %cst_10 = arith.constant 0.000000e+00 : f32
    %53 = vector.broadcast %cst_10 : f32 to vector<8x128xf32>
    %54 = arith.maximumf %52, %53 : vector<8x128xf32>
    %c3_11 = arith.constant 3 : index
    %55 = memref.load %arg5[%c3_11] : memref<32xf32, #tpu.memory_space<smem>>
    %56 = vector.broadcast %55 : f32 to vector<8x128xf32>
    %57 = arith.mulf %54, %56 : vector<8x128xf32>
    %58 = arith.addf %44, %57 : vector<8x128xf32>
    %59 = vector.extract_strided_slice %0 {offsets = [0, 4], sizes = [8, 1], strides = [1, 1]} : vector<8x32xf32> to vector<8x1xf32>
    %60 = vector.extract_strided_slice %1 {offsets = [4, 0], sizes = [1, 128], strides = [1, 1]} : vector<32x128xf32> to vector<1x128xf32>
    %61 = vector.broadcast %59 : vector<8x1xf32> to vector<8x128xf32>
    %62 = vector.broadcast %60 : vector<1x128xf32> to vector<8x128xf32>
    %63 = arith.addf %61, %62 : vector<8x128xf32>
    %c4 = arith.constant 4 : index
    %64 = memref.load %arg4[%c4] : memref<32xf32, #tpu.memory_space<smem>>
    %65 = vector.broadcast %64 : f32 to vector<8x128xf32>
    %66 = arith.addf %63, %65 : vector<8x128xf32>
    %cst_12 = arith.constant 0.000000e+00 : f32
    %67 = vector.broadcast %cst_12 : f32 to vector<8x128xf32>
    %68 = arith.maximumf %66, %67 : vector<8x128xf32>
    %c4_13 = arith.constant 4 : index
    %69 = memref.load %arg5[%c4_13] : memref<32xf32, #tpu.memory_space<smem>>
    %70 = vector.broadcast %69 : f32 to vector<8x128xf32>
    %71 = arith.mulf %68, %70 : vector<8x128xf32>
    %72 = arith.addf %58, %71 : vector<8x128xf32>
    %73 = vector.extract_strided_slice %0 {offsets = [0, 5], sizes = [8, 1], strides = [1, 1]} : vector<8x32xf32> to vector<8x1xf32>
    %74 = vector.extract_strided_slice %1 {offsets = [5, 0], sizes = [1, 128], strides = [1, 1]} : vector<32x128xf32> to vector<1x128xf32>
    %75 = vector.broadcast %73 : vector<8x1xf32> to vector<8x128xf32>
    %76 = vector.broadcast %74 : vector<1x128xf32> to vector<8x128xf32>
    %77 = arith.addf %75, %76 : vector<8x128xf32>
    %c5 = arith.constant 5 : index
    %78 = memref.load %arg4[%c5] : memref<32xf32, #tpu.memory_space<smem>>
    %79 = vector.broadcast %78 : f32 to vector<8x128xf32>
    %80 = arith.addf %77, %79 : vector<8x128xf32>
    %cst_14 = arith.constant 0.000000e+00 : f32
    %81 = vector.broadcast %cst_14 : f32 to vector<8x128xf32>
    %82 = arith.maximumf %80, %81 : vector<8x128xf32>
    %c5_15 = arith.constant 5 : index
    %83 = memref.load %arg5[%c5_15] : memref<32xf32, #tpu.memory_space<smem>>
    %84 = vector.broadcast %83 : f32 to vector<8x128xf32>
    %85 = arith.mulf %82, %84 : vector<8x128xf32>
    %86 = arith.addf %72, %85 : vector<8x128xf32>
    %87 = vector.extract_strided_slice %0 {offsets = [0, 6], sizes = [8, 1], strides = [1, 1]} : vector<8x32xf32> to vector<8x1xf32>
    %88 = vector.extract_strided_slice %1 {offsets = [6, 0], sizes = [1, 128], strides = [1, 1]} : vector<32x128xf32> to vector<1x128xf32>
    %89 = vector.broadcast %87 : vector<8x1xf32> to vector<8x128xf32>
    %90 = vector.broadcast %88 : vector<1x128xf32> to vector<8x128xf32>
    %91 = arith.addf %89, %90 : vector<8x128xf32>
    %c6 = arith.constant 6 : index
    %92 = memref.load %arg4[%c6] : memref<32xf32, #tpu.memory_space<smem>>
    %93 = vector.broadcast %92 : f32 to vector<8x128xf32>
    %94 = arith.addf %91, %93 : vector<8x128xf32>
    %cst_16 = arith.constant 0.000000e+00 : f32
    %95 = vector.broadcast %cst_16 : f32 to vector<8x128xf32>
    %96 = arith.maximumf %94, %95 : vector<8x128xf32>
    %c6_17 = arith.constant 6 : index
    %97 = memref.load %arg5[%c6_17] : memref<32xf32, #tpu.memory_space<smem>>
    %98 = vector.broadcast %97 : f32 to vector<8x128xf32>
    %99 = arith.mulf %96, %98 : vector<8x128xf32>
    %100 = arith.addf %86, %99 : vector<8x128xf32>
    %101 = vector.extract_strided_slice %0 {offsets = [0, 7], sizes = [8, 1], strides = [1, 1]} : vector<8x32xf32> to vector<8x1xf32>
    %102 = vector.extract_strided_slice %1 {offsets = [7, 0], sizes = [1, 128], strides = [1, 1]} : vector<32x128xf32> to vector<1x128xf32>
    %103 = vector.broadcast %101 : vector<8x1xf32> to vector<8x128xf32>
    %104 = vector.broadcast %102 : vector<1x128xf32> to vector<8x128xf32>
    %105 = arith.addf %103, %104 : vector<8x128xf32>
    %c7 = arith.constant 7 : index
    %106 = memref.load %arg4[%c7] : memref<32xf32, #tpu.memory_space<smem>>
    %107 = vector.broadcast %106 : f32 to vector<8x128xf32>
    %108 = arith.addf %105, %107 : vector<8x128xf32>
    %cst_18 = arith.constant 0.000000e+00 : f32
    %109 = vector.broadcast %cst_18 : f32 to vector<8x128xf32>
    %110 = arith.maximumf %108, %109 : vector<8x128xf32>
    %c7_19 = arith.constant 7 : index
    %111 = memref.load %arg5[%c7_19] : memref<32xf32, #tpu.memory_space<smem>>
    %112 = vector.broadcast %111 : f32 to vector<8x128xf32>
    %113 = arith.mulf %110, %112 : vector<8x128xf32>
    %114 = arith.addf %100, %113 : vector<8x128xf32>
    %115 = vector.extract_strided_slice %0 {offsets = [0, 8], sizes = [8, 1], strides = [1, 1]} : vector<8x32xf32> to vector<8x1xf32>
    %116 = vector.extract_strided_slice %1 {offsets = [8, 0], sizes = [1, 128], strides = [1, 1]} : vector<32x128xf32> to vector<1x128xf32>
    %117 = vector.broadcast %115 : vector<8x1xf32> to vector<8x128xf32>
    %118 = vector.broadcast %116 : vector<1x128xf32> to vector<8x128xf32>
    %119 = arith.addf %117, %118 : vector<8x128xf32>
    %c8 = arith.constant 8 : index
    %120 = memref.load %arg4[%c8] : memref<32xf32, #tpu.memory_space<smem>>
    %121 = vector.broadcast %120 : f32 to vector<8x128xf32>
    %122 = arith.addf %119, %121 : vector<8x128xf32>
    %cst_20 = arith.constant 0.000000e+00 : f32
    %123 = vector.broadcast %cst_20 : f32 to vector<8x128xf32>
    %124 = arith.maximumf %122, %123 : vector<8x128xf32>
    %c8_21 = arith.constant 8 : index
    %125 = memref.load %arg5[%c8_21] : memref<32xf32, #tpu.memory_space<smem>>
    %126 = vector.broadcast %125 : f32 to vector<8x128xf32>
    %127 = arith.mulf %124, %126 : vector<8x128xf32>
    %128 = arith.addf %114, %127 : vector<8x128xf32>
    %129 = vector.extract_strided_slice %0 {offsets = [0, 9], sizes = [8, 1], strides = [1, 1]} : vector<8x32xf32> to vector<8x1xf32>
    %130 = vector.extract_strided_slice %1 {offsets = [9, 0], sizes = [1, 128], strides = [1, 1]} : vector<32x128xf32> to vector<1x128xf32>
    %131 = vector.broadcast %129 : vector<8x1xf32> to vector<8x128xf32>
    %132 = vector.broadcast %130 : vector<1x128xf32> to vector<8x128xf32>
    %133 = arith.addf %131, %132 : vector<8x128xf32>
    %c9 = arith.constant 9 : index
    %134 = memref.load %arg4[%c9] : memref<32xf32, #tpu.memory_space<smem>>
    %135 = vector.broadcast %134 : f32 to vector<8x128xf32>
    %136 = arith.addf %133, %135 : vector<8x128xf32>
    %cst_22 = arith.constant 0.000000e+00 : f32
    %137 = vector.broadcast %cst_22 : f32 to vector<8x128xf32>
    %138 = arith.maximumf %136, %137 : vector<8x128xf32>
    %c9_23 = arith.constant 9 : index
    %139 = memref.load %arg5[%c9_23] : memref<32xf32, #tpu.memory_space<smem>>
    %140 = vector.broadcast %139 : f32 to vector<8x128xf32>
    %141 = arith.mulf %138, %140 : vector<8x128xf32>
    %142 = arith.addf %128, %141 : vector<8x128xf32>
    %143 = vector.extract_strided_slice %0 {offsets = [0, 10], sizes = [8, 1], strides = [1, 1]} : vector<8x32xf32> to vector<8x1xf32>
    %144 = vector.extract_strided_slice %1 {offsets = [10, 0], sizes = [1, 128], strides = [1, 1]} : vector<32x128xf32> to vector<1x128xf32>
    %145 = vector.broadcast %143 : vector<8x1xf32> to vector<8x128xf32>
    %146 = vector.broadcast %144 : vector<1x128xf32> to vector<8x128xf32>
    %147 = arith.addf %145, %146 : vector<8x128xf32>
    %c10 = arith.constant 10 : index
    %148 = memref.load %arg4[%c10] : memref<32xf32, #tpu.memory_space<smem>>
    %149 = vector.broadcast %148 : f32 to vector<8x128xf32>
    %150 = arith.addf %147, %149 : vector<8x128xf32>
    %cst_24 = arith.constant 0.000000e+00 : f32
    %151 = vector.broadcast %cst_24 : f32 to vector<8x128xf32>
    %152 = arith.maximumf %150, %151 : vector<8x128xf32>
    %c10_25 = arith.constant 10 : index
    %153 = memref.load %arg5[%c10_25] : memref<32xf32, #tpu.memory_space<smem>>
    %154 = vector.broadcast %153 : f32 to vector<8x128xf32>
    %155 = arith.mulf %152, %154 : vector<8x128xf32>
    %156 = arith.addf %142, %155 : vector<8x128xf32>
    %157 = vector.extract_strided_slice %0 {offsets = [0, 11], sizes = [8, 1], strides = [1, 1]} : vector<8x32xf32> to vector<8x1xf32>
    %158 = vector.extract_strided_slice %1 {offsets = [11, 0], sizes = [1, 128], strides = [1, 1]} : vector<32x128xf32> to vector<1x128xf32>
    %159 = vector.broadcast %157 : vector<8x1xf32> to vector<8x128xf32>
    %160 = vector.broadcast %158 : vector<1x128xf32> to vector<8x128xf32>
    %161 = arith.addf %159, %160 : vector<8x128xf32>
    %c11 = arith.constant 11 : index
    %162 = memref.load %arg4[%c11] : memref<32xf32, #tpu.memory_space<smem>>
    %163 = vector.broadcast %162 : f32 to vector<8x128xf32>
    %164 = arith.addf %161, %163 : vector<8x128xf32>
    %cst_26 = arith.constant 0.000000e+00 : f32
    %165 = vector.broadcast %cst_26 : f32 to vector<8x128xf32>
    %166 = arith.maximumf %164, %165 : vector<8x128xf32>
    %c11_27 = arith.constant 11 : index
    %167 = memref.load %arg5[%c11_27] : memref<32xf32, #tpu.memory_space<smem>>
    %168 = vector.broadcast %167 : f32 to vector<8x128xf32>
    %169 = arith.mulf %166, %168 : vector<8x128xf32>
    %170 = arith.addf %156, %169 : vector<8x128xf32>
    %171 = vector.extract_strided_slice %0 {offsets = [0, 12], sizes = [8, 1], strides = [1, 1]} : vector<8x32xf32> to vector<8x1xf32>
    %172 = vector.extract_strided_slice %1 {offsets = [12, 0], sizes = [1, 128], strides = [1, 1]} : vector<32x128xf32> to vector<1x128xf32>
    %173 = vector.broadcast %171 : vector<8x1xf32> to vector<8x128xf32>
    %174 = vector.broadcast %172 : vector<1x128xf32> to vector<8x128xf32>
    %175 = arith.addf %173, %174 : vector<8x128xf32>
    %c12 = arith.constant 12 : index
    %176 = memref.load %arg4[%c12] : memref<32xf32, #tpu.memory_space<smem>>
    %177 = vector.broadcast %176 : f32 to vector<8x128xf32>
    %178 = arith.addf %175, %177 : vector<8x128xf32>
    %cst_28 = arith.constant 0.000000e+00 : f32
    %179 = vector.broadcast %cst_28 : f32 to vector<8x128xf32>
    %180 = arith.maximumf %178, %179 : vector<8x128xf32>
    %c12_29 = arith.constant 12 : index
    %181 = memref.load %arg5[%c12_29] : memref<32xf32, #tpu.memory_space<smem>>
    %182 = vector.broadcast %181 : f32 to vector<8x128xf32>
    %183 = arith.mulf %180, %182 : vector<8x128xf32>
    %184 = arith.addf %170, %183 : vector<8x128xf32>
    %185 = vector.extract_strided_slice %0 {offsets = [0, 13], sizes = [8, 1], strides = [1, 1]} : vector<8x32xf32> to vector<8x1xf32>
    %186 = vector.extract_strided_slice %1 {offsets = [13, 0], sizes = [1, 128], strides = [1, 1]} : vector<32x128xf32> to vector<1x128xf32>
    %187 = vector.broadcast %185 : vector<8x1xf32> to vector<8x128xf32>
    %188 = vector.broadcast %186 : vector<1x128xf32> to vector<8x128xf32>
    %189 = arith.addf %187, %188 : vector<8x128xf32>
    %c13 = arith.constant 13 : index
    %190 = memref.load %arg4[%c13] : memref<32xf32, #tpu.memory_space<smem>>
    %191 = vector.broadcast %190 : f32 to vector<8x128xf32>
    %192 = arith.addf %189, %191 : vector<8x128xf32>
    %cst_30 = arith.constant 0.000000e+00 : f32
    %193 = vector.broadcast %cst_30 : f32 to vector<8x128xf32>
    %194 = arith.maximumf %192, %193 : vector<8x128xf32>
    %c13_31 = arith.constant 13 : index
    %195 = memref.load %arg5[%c13_31] : memref<32xf32, #tpu.memory_space<smem>>
    %196 = vector.broadcast %195 : f32 to vector<8x128xf32>
    %197 = arith.mulf %194, %196 : vector<8x128xf32>
    %198 = arith.addf %184, %197 : vector<8x128xf32>
    %199 = vector.extract_strided_slice %0 {offsets = [0, 14], sizes = [8, 1], strides = [1, 1]} : vector<8x32xf32> to vector<8x1xf32>
    %200 = vector.extract_strided_slice %1 {offsets = [14, 0], sizes = [1, 128], strides = [1, 1]} : vector<32x128xf32> to vector<1x128xf32>
    %201 = vector.broadcast %199 : vector<8x1xf32> to vector<8x128xf32>
    %202 = vector.broadcast %200 : vector<1x128xf32> to vector<8x128xf32>
    %203 = arith.addf %201, %202 : vector<8x128xf32>
    %c14 = arith.constant 14 : index
    %204 = memref.load %arg4[%c14] : memref<32xf32, #tpu.memory_space<smem>>
    %205 = vector.broadcast %204 : f32 to vector<8x128xf32>
    %206 = arith.addf %203, %205 : vector<8x128xf32>
    %cst_32 = arith.constant 0.000000e+00 : f32
    %207 = vector.broadcast %cst_32 : f32 to vector<8x128xf32>
    %208 = arith.maximumf %206, %207 : vector<8x128xf32>
    %c14_33 = arith.constant 14 : index
    %209 = memref.load %arg5[%c14_33] : memref<32xf32, #tpu.memory_space<smem>>
    %210 = vector.broadcast %209 : f32 to vector<8x128xf32>
    %211 = arith.mulf %208, %210 : vector<8x128xf32>
    %212 = arith.addf %198, %211 : vector<8x128xf32>
    %213 = vector.extract_strided_slice %0 {offsets = [0, 15], sizes = [8, 1], strides = [1, 1]} : vector<8x32xf32> to vector<8x1xf32>
    %214 = vector.extract_strided_slice %1 {offsets = [15, 0], sizes = [1, 128], strides = [1, 1]} : vector<32x128xf32> to vector<1x128xf32>
    %215 = vector.broadcast %213 : vector<8x1xf32> to vector<8x128xf32>
    %216 = vector.broadcast %214 : vector<1x128xf32> to vector<8x128xf32>
    %217 = arith.addf %215, %216 : vector<8x128xf32>
    %c15 = arith.constant 15 : index
    %218 = memref.load %arg4[%c15] : memref<32xf32, #tpu.memory_space<smem>>
    %219 = vector.broadcast %218 : f32 to vector<8x128xf32>
    %220 = arith.addf %217, %219 : vector<8x128xf32>
    %cst_34 = arith.constant 0.000000e+00 : f32
    %221 = vector.broadcast %cst_34 : f32 to vector<8x128xf32>
    %222 = arith.maximumf %220, %221 : vector<8x128xf32>
    %c15_35 = arith.constant 15 : index
    %223 = memref.load %arg5[%c15_35] : memref<32xf32, #tpu.memory_space<smem>>
    %224 = vector.broadcast %223 : f32 to vector<8x128xf32>
    %225 = arith.mulf %222, %224 : vector<8x128xf32>
    %226 = arith.addf %212, %225 : vector<8x128xf32>
    %227 = vector.extract_strided_slice %0 {offsets = [0, 16], sizes = [8, 1], strides = [1, 1]} : vector<8x32xf32> to vector<8x1xf32>
    %228 = vector.extract_strided_slice %1 {offsets = [16, 0], sizes = [1, 128], strides = [1, 1]} : vector<32x128xf32> to vector<1x128xf32>
    %229 = vector.broadcast %227 : vector<8x1xf32> to vector<8x128xf32>
    %230 = vector.broadcast %228 : vector<1x128xf32> to vector<8x128xf32>
    %231 = arith.addf %229, %230 : vector<8x128xf32>
    %c16 = arith.constant 16 : index
    %232 = memref.load %arg4[%c16] : memref<32xf32, #tpu.memory_space<smem>>
    %233 = vector.broadcast %232 : f32 to vector<8x128xf32>
    %234 = arith.addf %231, %233 : vector<8x128xf32>
    %cst_36 = arith.constant 0.000000e+00 : f32
    %235 = vector.broadcast %cst_36 : f32 to vector<8x128xf32>
    %236 = arith.maximumf %234, %235 : vector<8x128xf32>
    %c16_37 = arith.constant 16 : index
    %237 = memref.load %arg5[%c16_37] : memref<32xf32, #tpu.memory_space<smem>>
    %238 = vector.broadcast %237 : f32 to vector<8x128xf32>
    %239 = arith.mulf %236, %238 : vector<8x128xf32>
    %240 = arith.addf %226, %239 : vector<8x128xf32>
    %241 = vector.extract_strided_slice %0 {offsets = [0, 17], sizes = [8, 1], strides = [1, 1]} : vector<8x32xf32> to vector<8x1xf32>
    %242 = vector.extract_strided_slice %1 {offsets = [17, 0], sizes = [1, 128], strides = [1, 1]} : vector<32x128xf32> to vector<1x128xf32>
    %243 = vector.broadcast %241 : vector<8x1xf32> to vector<8x128xf32>
    %244 = vector.broadcast %242 : vector<1x128xf32> to vector<8x128xf32>
    %245 = arith.addf %243, %244 : vector<8x128xf32>
    %c17 = arith.constant 17 : index
    %246 = memref.load %arg4[%c17] : memref<32xf32, #tpu.memory_space<smem>>
    %247 = vector.broadcast %246 : f32 to vector<8x128xf32>
    %248 = arith.addf %245, %247 : vector<8x128xf32>
    %cst_38 = arith.constant 0.000000e+00 : f32
    %249 = vector.broadcast %cst_38 : f32 to vector<8x128xf32>
    %250 = arith.maximumf %248, %249 : vector<8x128xf32>
    %c17_39 = arith.constant 17 : index
    %251 = memref.load %arg5[%c17_39] : memref<32xf32, #tpu.memory_space<smem>>
    %252 = vector.broadcast %251 : f32 to vector<8x128xf32>
    %253 = arith.mulf %250, %252 : vector<8x128xf32>
    %254 = arith.addf %240, %253 : vector<8x128xf32>
    %255 = vector.extract_strided_slice %0 {offsets = [0, 18], sizes = [8, 1], strides = [1, 1]} : vector<8x32xf32> to vector<8x1xf32>
    %256 = vector.extract_strided_slice %1 {offsets = [18, 0], sizes = [1, 128], strides = [1, 1]} : vector<32x128xf32> to vector<1x128xf32>
    %257 = vector.broadcast %255 : vector<8x1xf32> to vector<8x128xf32>
    %258 = vector.broadcast %256 : vector<1x128xf32> to vector<8x128xf32>
    %259 = arith.addf %257, %258 : vector<8x128xf32>
    %c18 = arith.constant 18 : index
    %260 = memref.load %arg4[%c18] : memref<32xf32, #tpu.memory_space<smem>>
    %261 = vector.broadcast %260 : f32 to vector<8x128xf32>
    %262 = arith.addf %259, %261 : vector<8x128xf32>
    %cst_40 = arith.constant 0.000000e+00 : f32
    %263 = vector.broadcast %cst_40 : f32 to vector<8x128xf32>
    %264 = arith.maximumf %262, %263 : vector<8x128xf32>
    %c18_41 = arith.constant 18 : index
    %265 = memref.load %arg5[%c18_41] : memref<32xf32, #tpu.memory_space<smem>>
    %266 = vector.broadcast %265 : f32 to vector<8x128xf32>
    %267 = arith.mulf %264, %266 : vector<8x128xf32>
    %268 = arith.addf %254, %267 : vector<8x128xf32>
    %269 = vector.extract_strided_slice %0 {offsets = [0, 19], sizes = [8, 1], strides = [1, 1]} : vector<8x32xf32> to vector<8x1xf32>
    %270 = vector.extract_strided_slice %1 {offsets = [19, 0], sizes = [1, 128], strides = [1, 1]} : vector<32x128xf32> to vector<1x128xf32>
    %271 = vector.broadcast %269 : vector<8x1xf32> to vector<8x128xf32>
    %272 = vector.broadcast %270 : vector<1x128xf32> to vector<8x128xf32>
    %273 = arith.addf %271, %272 : vector<8x128xf32>
    %c19 = arith.constant 19 : index
    %274 = memref.load %arg4[%c19] : memref<32xf32, #tpu.memory_space<smem>>
    %275 = vector.broadcast %274 : f32 to vector<8x128xf32>
    %276 = arith.addf %273, %275 : vector<8x128xf32>
    %cst_42 = arith.constant 0.000000e+00 : f32
    %277 = vector.broadcast %cst_42 : f32 to vector<8x128xf32>
    %278 = arith.maximumf %276, %277 : vector<8x128xf32>
    %c19_43 = arith.constant 19 : index
    %279 = memref.load %arg5[%c19_43] : memref<32xf32, #tpu.memory_space<smem>>
    %280 = vector.broadcast %279 : f32 to vector<8x128xf32>
    %281 = arith.mulf %278, %280 : vector<8x128xf32>
    %282 = arith.addf %268, %281 : vector<8x128xf32>
    %283 = vector.extract_strided_slice %0 {offsets = [0, 20], sizes = [8, 1], strides = [1, 1]} : vector<8x32xf32> to vector<8x1xf32>
    %284 = vector.extract_strided_slice %1 {offsets = [20, 0], sizes = [1, 128], strides = [1, 1]} : vector<32x128xf32> to vector<1x128xf32>
    %285 = vector.broadcast %283 : vector<8x1xf32> to vector<8x128xf32>
    %286 = vector.broadcast %284 : vector<1x128xf32> to vector<8x128xf32>
    %287 = arith.addf %285, %286 : vector<8x128xf32>
    %c20 = arith.constant 20 : index
    %288 = memref.load %arg4[%c20] : memref<32xf32, #tpu.memory_space<smem>>
    %289 = vector.broadcast %288 : f32 to vector<8x128xf32>
    %290 = arith.addf %287, %289 : vector<8x128xf32>
    %cst_44 = arith.constant 0.000000e+00 : f32
    %291 = vector.broadcast %cst_44 : f32 to vector<8x128xf32>
    %292 = arith.maximumf %290, %291 : vector<8x128xf32>
    %c20_45 = arith.constant 20 : index
    %293 = memref.load %arg5[%c20_45] : memref<32xf32, #tpu.memory_space<smem>>
    %294 = vector.broadcast %293 : f32 to vector<8x128xf32>
    %295 = arith.mulf %292, %294 : vector<8x128xf32>
    %296 = arith.addf %282, %295 : vector<8x128xf32>
    %297 = vector.extract_strided_slice %0 {offsets = [0, 21], sizes = [8, 1], strides = [1, 1]} : vector<8x32xf32> to vector<8x1xf32>
    %298 = vector.extract_strided_slice %1 {offsets = [21, 0], sizes = [1, 128], strides = [1, 1]} : vector<32x128xf32> to vector<1x128xf32>
    %299 = vector.broadcast %297 : vector<8x1xf32> to vector<8x128xf32>
    %300 = vector.broadcast %298 : vector<1x128xf32> to vector<8x128xf32>
    %301 = arith.addf %299, %300 : vector<8x128xf32>
    %c21 = arith.constant 21 : index
    %302 = memref.load %arg4[%c21] : memref<32xf32, #tpu.memory_space<smem>>
    %303 = vector.broadcast %302 : f32 to vector<8x128xf32>
    %304 = arith.addf %301, %303 : vector<8x128xf32>
    %cst_46 = arith.constant 0.000000e+00 : f32
    %305 = vector.broadcast %cst_46 : f32 to vector<8x128xf32>
    %306 = arith.maximumf %304, %305 : vector<8x128xf32>
    %c21_47 = arith.constant 21 : index
    %307 = memref.load %arg5[%c21_47] : memref<32xf32, #tpu.memory_space<smem>>
    %308 = vector.broadcast %307 : f32 to vector<8x128xf32>
    %309 = arith.mulf %306, %308 : vector<8x128xf32>
    %310 = arith.addf %296, %309 : vector<8x128xf32>
    %311 = vector.extract_strided_slice %0 {offsets = [0, 22], sizes = [8, 1], strides = [1, 1]} : vector<8x32xf32> to vector<8x1xf32>
    %312 = vector.extract_strided_slice %1 {offsets = [22, 0], sizes = [1, 128], strides = [1, 1]} : vector<32x128xf32> to vector<1x128xf32>
    %313 = vector.broadcast %311 : vector<8x1xf32> to vector<8x128xf32>
    %314 = vector.broadcast %312 : vector<1x128xf32> to vector<8x128xf32>
    %315 = arith.addf %313, %314 : vector<8x128xf32>
    %c22 = arith.constant 22 : index
    %316 = memref.load %arg4[%c22] : memref<32xf32, #tpu.memory_space<smem>>
    %317 = vector.broadcast %316 : f32 to vector<8x128xf32>
    %318 = arith.addf %315, %317 : vector<8x128xf32>
    %cst_48 = arith.constant 0.000000e+00 : f32
    %319 = vector.broadcast %cst_48 : f32 to vector<8x128xf32>
    %320 = arith.maximumf %318, %319 : vector<8x128xf32>
    %c22_49 = arith.constant 22 : index
    %321 = memref.load %arg5[%c22_49] : memref<32xf32, #tpu.memory_space<smem>>
    %322 = vector.broadcast %321 : f32 to vector<8x128xf32>
    %323 = arith.mulf %320, %322 : vector<8x128xf32>
    %324 = arith.addf %310, %323 : vector<8x128xf32>
    %325 = vector.extract_strided_slice %0 {offsets = [0, 23], sizes = [8, 1], strides = [1, 1]} : vector<8x32xf32> to vector<8x1xf32>
    %326 = vector.extract_strided_slice %1 {offsets = [23, 0], sizes = [1, 128], strides = [1, 1]} : vector<32x128xf32> to vector<1x128xf32>
    %327 = vector.broadcast %325 : vector<8x1xf32> to vector<8x128xf32>
    %328 = vector.broadcast %326 : vector<1x128xf32> to vector<8x128xf32>
    %329 = arith.addf %327, %328 : vector<8x128xf32>
    %c23 = arith.constant 23 : index
    %330 = memref.load %arg4[%c23] : memref<32xf32, #tpu.memory_space<smem>>
    %331 = vector.broadcast %330 : f32 to vector<8x128xf32>
    %332 = arith.addf %329, %331 : vector<8x128xf32>
    %cst_50 = arith.constant 0.000000e+00 : f32
    %333 = vector.broadcast %cst_50 : f32 to vector<8x128xf32>
    %334 = arith.maximumf %332, %333 : vector<8x128xf32>
    %c23_51 = arith.constant 23 : index
    %335 = memref.load %arg5[%c23_51] : memref<32xf32, #tpu.memory_space<smem>>
    %336 = vector.broadcast %335 : f32 to vector<8x128xf32>
    %337 = arith.mulf %334, %336 : vector<8x128xf32>
    %338 = arith.addf %324, %337 : vector<8x128xf32>
    %339 = vector.extract_strided_slice %0 {offsets = [0, 24], sizes = [8, 1], strides = [1, 1]} : vector<8x32xf32> to vector<8x1xf32>
    %340 = vector.extract_strided_slice %1 {offsets = [24, 0], sizes = [1, 128], strides = [1, 1]} : vector<32x128xf32> to vector<1x128xf32>
    %341 = vector.broadcast %339 : vector<8x1xf32> to vector<8x128xf32>
    %342 = vector.broadcast %340 : vector<1x128xf32> to vector<8x128xf32>
    %343 = arith.addf %341, %342 : vector<8x128xf32>
    %c24 = arith.constant 24 : index
    %344 = memref.load %arg4[%c24] : memref<32xf32, #tpu.memory_space<smem>>
    %345 = vector.broadcast %344 : f32 to vector<8x128xf32>
    %346 = arith.addf %343, %345 : vector<8x128xf32>
    %cst_52 = arith.constant 0.000000e+00 : f32
    %347 = vector.broadcast %cst_52 : f32 to vector<8x128xf32>
    %348 = arith.maximumf %346, %347 : vector<8x128xf32>
    %c24_53 = arith.constant 24 : index
    %349 = memref.load %arg5[%c24_53] : memref<32xf32, #tpu.memory_space<smem>>
    %350 = vector.broadcast %349 : f32 to vector<8x128xf32>
    %351 = arith.mulf %348, %350 : vector<8x128xf32>
    %352 = arith.addf %338, %351 : vector<8x128xf32>
    %353 = vector.extract_strided_slice %0 {offsets = [0, 25], sizes = [8, 1], strides = [1, 1]} : vector<8x32xf32> to vector<8x1xf32>
    %354 = vector.extract_strided_slice %1 {offsets = [25, 0], sizes = [1, 128], strides = [1, 1]} : vector<32x128xf32> to vector<1x128xf32>
    %355 = vector.broadcast %353 : vector<8x1xf32> to vector<8x128xf32>
    %356 = vector.broadcast %354 : vector<1x128xf32> to vector<8x128xf32>
    %357 = arith.addf %355, %356 : vector<8x128xf32>
    %c25 = arith.constant 25 : index
    %358 = memref.load %arg4[%c25] : memref<32xf32, #tpu.memory_space<smem>>
    %359 = vector.broadcast %358 : f32 to vector<8x128xf32>
    %360 = arith.addf %357, %359 : vector<8x128xf32>
    %cst_54 = arith.constant 0.000000e+00 : f32
    %361 = vector.broadcast %cst_54 : f32 to vector<8x128xf32>
    %362 = arith.maximumf %360, %361 : vector<8x128xf32>
    %c25_55 = arith.constant 25 : index
    %363 = memref.load %arg5[%c25_55] : memref<32xf32, #tpu.memory_space<smem>>
    %364 = vector.broadcast %363 : f32 to vector<8x128xf32>
    %365 = arith.mulf %362, %364 : vector<8x128xf32>
    %366 = arith.addf %352, %365 : vector<8x128xf32>
    %367 = vector.extract_strided_slice %0 {offsets = [0, 26], sizes = [8, 1], strides = [1, 1]} : vector<8x32xf32> to vector<8x1xf32>
    %368 = vector.extract_strided_slice %1 {offsets = [26, 0], sizes = [1, 128], strides = [1, 1]} : vector<32x128xf32> to vector<1x128xf32>
    %369 = vector.broadcast %367 : vector<8x1xf32> to vector<8x128xf32>
    %370 = vector.broadcast %368 : vector<1x128xf32> to vector<8x128xf32>
    %371 = arith.addf %369, %370 : vector<8x128xf32>
    %c26 = arith.constant 26 : index
    %372 = memref.load %arg4[%c26] : memref<32xf32, #tpu.memory_space<smem>>
    %373 = vector.broadcast %372 : f32 to vector<8x128xf32>
    %374 = arith.addf %371, %373 : vector<8x128xf32>
    %cst_56 = arith.constant 0.000000e+00 : f32
    %375 = vector.broadcast %cst_56 : f32 to vector<8x128xf32>
    %376 = arith.maximumf %374, %375 : vector<8x128xf32>
    %c26_57 = arith.constant 26 : index
    %377 = memref.load %arg5[%c26_57] : memref<32xf32, #tpu.memory_space<smem>>
    %378 = vector.broadcast %377 : f32 to vector<8x128xf32>
    %379 = arith.mulf %376, %378 : vector<8x128xf32>
    %380 = arith.addf %366, %379 : vector<8x128xf32>
    %381 = vector.extract_strided_slice %0 {offsets = [0, 27], sizes = [8, 1], strides = [1, 1]} : vector<8x32xf32> to vector<8x1xf32>
    %382 = vector.extract_strided_slice %1 {offsets = [27, 0], sizes = [1, 128], strides = [1, 1]} : vector<32x128xf32> to vector<1x128xf32>
    %383 = vector.broadcast %381 : vector<8x1xf32> to vector<8x128xf32>
    %384 = vector.broadcast %382 : vector<1x128xf32> to vector<8x128xf32>
    %385 = arith.addf %383, %384 : vector<8x128xf32>
    %c27 = arith.constant 27 : index
    %386 = memref.load %arg4[%c27] : memref<32xf32, #tpu.memory_space<smem>>
    %387 = vector.broadcast %386 : f32 to vector<8x128xf32>
    %388 = arith.addf %385, %387 : vector<8x128xf32>
    %cst_58 = arith.constant 0.000000e+00 : f32
    %389 = vector.broadcast %cst_58 : f32 to vector<8x128xf32>
    %390 = arith.maximumf %388, %389 : vector<8x128xf32>
    %c27_59 = arith.constant 27 : index
    %391 = memref.load %arg5[%c27_59] : memref<32xf32, #tpu.memory_space<smem>>
    %392 = vector.broadcast %391 : f32 to vector<8x128xf32>
    %393 = arith.mulf %390, %392 : vector<8x128xf32>
    %394 = arith.addf %380, %393 : vector<8x128xf32>
    %395 = vector.extract_strided_slice %0 {offsets = [0, 28], sizes = [8, 1], strides = [1, 1]} : vector<8x32xf32> to vector<8x1xf32>
    %396 = vector.extract_strided_slice %1 {offsets = [28, 0], sizes = [1, 128], strides = [1, 1]} : vector<32x128xf32> to vector<1x128xf32>
    %397 = vector.broadcast %395 : vector<8x1xf32> to vector<8x128xf32>
    %398 = vector.broadcast %396 : vector<1x128xf32> to vector<8x128xf32>
    %399 = arith.addf %397, %398 : vector<8x128xf32>
    %c28 = arith.constant 28 : index
    %400 = memref.load %arg4[%c28] : memref<32xf32, #tpu.memory_space<smem>>
    %401 = vector.broadcast %400 : f32 to vector<8x128xf32>
    %402 = arith.addf %399, %401 : vector<8x128xf32>
    %cst_60 = arith.constant 0.000000e+00 : f32
    %403 = vector.broadcast %cst_60 : f32 to vector<8x128xf32>
    %404 = arith.maximumf %402, %403 : vector<8x128xf32>
    %c28_61 = arith.constant 28 : index
    %405 = memref.load %arg5[%c28_61] : memref<32xf32, #tpu.memory_space<smem>>
    %406 = vector.broadcast %405 : f32 to vector<8x128xf32>
    %407 = arith.mulf %404, %406 : vector<8x128xf32>
    %408 = arith.addf %394, %407 : vector<8x128xf32>
    %409 = vector.extract_strided_slice %0 {offsets = [0, 29], sizes = [8, 1], strides = [1, 1]} : vector<8x32xf32> to vector<8x1xf32>
    %410 = vector.extract_strided_slice %1 {offsets = [29, 0], sizes = [1, 128], strides = [1, 1]} : vector<32x128xf32> to vector<1x128xf32>
    %411 = vector.broadcast %409 : vector<8x1xf32> to vector<8x128xf32>
    %412 = vector.broadcast %410 : vector<1x128xf32> to vector<8x128xf32>
    %413 = arith.addf %411, %412 : vector<8x128xf32>
    %c29 = arith.constant 29 : index
    %414 = memref.load %arg4[%c29] : memref<32xf32, #tpu.memory_space<smem>>
    %415 = vector.broadcast %414 : f32 to vector<8x128xf32>
    %416 = arith.addf %413, %415 : vector<8x128xf32>
    %cst_62 = arith.constant 0.000000e+00 : f32
    %417 = vector.broadcast %cst_62 : f32 to vector<8x128xf32>
    %418 = arith.maximumf %416, %417 : vector<8x128xf32>
    %c29_63 = arith.constant 29 : index
    %419 = memref.load %arg5[%c29_63] : memref<32xf32, #tpu.memory_space<smem>>
    %420 = vector.broadcast %419 : f32 to vector<8x128xf32>
    %421 = arith.mulf %418, %420 : vector<8x128xf32>
    %422 = arith.addf %408, %421 : vector<8x128xf32>
    %423 = vector.extract_strided_slice %0 {offsets = [0, 30], sizes = [8, 1], strides = [1, 1]} : vector<8x32xf32> to vector<8x1xf32>
    %424 = vector.extract_strided_slice %1 {offsets = [30, 0], sizes = [1, 128], strides = [1, 1]} : vector<32x128xf32> to vector<1x128xf32>
    %425 = vector.broadcast %423 : vector<8x1xf32> to vector<8x128xf32>
    %426 = vector.broadcast %424 : vector<1x128xf32> to vector<8x128xf32>
    %427 = arith.addf %425, %426 : vector<8x128xf32>
    %c30 = arith.constant 30 : index
    %428 = memref.load %arg4[%c30] : memref<32xf32, #tpu.memory_space<smem>>
    %429 = vector.broadcast %428 : f32 to vector<8x128xf32>
    %430 = arith.addf %427, %429 : vector<8x128xf32>
    %cst_64 = arith.constant 0.000000e+00 : f32
    %431 = vector.broadcast %cst_64 : f32 to vector<8x128xf32>
    %432 = arith.maximumf %430, %431 : vector<8x128xf32>
    %c30_65 = arith.constant 30 : index
    %433 = memref.load %arg5[%c30_65] : memref<32xf32, #tpu.memory_space<smem>>
    %434 = vector.broadcast %433 : f32 to vector<8x128xf32>
    %435 = arith.mulf %432, %434 : vector<8x128xf32>
    %436 = arith.addf %422, %435 : vector<8x128xf32>
    %437 = vector.extract_strided_slice %0 {offsets = [0, 31], sizes = [8, 1], strides = [1, 1]} : vector<8x32xf32> to vector<8x1xf32>
    %438 = vector.extract_strided_slice %1 {offsets = [31, 0], sizes = [1, 128], strides = [1, 1]} : vector<32x128xf32> to vector<1x128xf32>
    %439 = vector.broadcast %437 : vector<8x1xf32> to vector<8x128xf32>
    %440 = vector.broadcast %438 : vector<1x128xf32> to vector<8x128xf32>
    %441 = arith.addf %439, %440 : vector<8x128xf32>
    %c31 = arith.constant 31 : index
    %442 = memref.load %arg4[%c31] : memref<32xf32, #tpu.memory_space<smem>>
    %443 = vector.broadcast %442 : f32 to vector<8x128xf32>
    %444 = arith.addf %441, %443 : vector<8x128xf32>
    %cst_66 = arith.constant 0.000000e+00 : f32
    %445 = vector.broadcast %cst_66 : f32 to vector<8x128xf32>
    %446 = arith.maximumf %444, %445 : vector<8x128xf32>
    %c31_67 = arith.constant 31 : index
    %447 = memref.load %arg5[%c31_67] : memref<32xf32, #tpu.memory_space<smem>>
    %448 = vector.broadcast %447 : f32 to vector<8x128xf32>
    %449 = arith.mulf %446, %448 : vector<8x128xf32>
    %450 = arith.addf %436, %449 : vector<8x128xf32>
    %c0_68 = arith.constant 0 : index
    %451 = memref.load %arg6[%c0_68] : memref<1xf32, #tpu.memory_space<smem>>
    %452 = vector.broadcast %451 : f32 to vector<8x128xf32>
    %453 = arith.addf %450, %452 : vector<8x128xf32>
    %c0_69 = arith.constant 0 : index
    %c0_70 = arith.constant 0 : index
    %454 = vector.load %arg7[%c0_69, %c0_70] : memref<8x128xf32, #tpu.memory_space<vmem>>, vector<8x128xf32>
    tpu.vector_store %arg7[%c0_69, %c0_70], %453 {strides = array<i32>} : memref<8x128xf32, #tpu.memory_space<vmem>>, vector<8x128xf32>,
    return
  }
  func.func @transform_0(%arg0: i32, %arg1: i32) -> (i32, i32) {
    %c0_i32 = arith.constant 0 : i32
    %c0_i32_0 = arith.constant 0 : i32
    return %arg0, %c0_i32 : i32, i32
  }
  func.func @transform_1(%arg0: i32, %arg1: i32) -> (i32, i32) {
    %c0_i32 = arith.constant 0 : i32
    %c0_i32_0 = arith.constant 0 : i32
    return %c0_i32, %arg1 : i32, i32
  }
  func.func @transform_2(%arg0: i32, %arg1: i32) -> i32 {
    %c0_i32 = arith.constant 0 : i32
    %c0_i32_0 = arith.constant 0 : i32
    return %c0_i32 : i32
  }
  func.func @transform_3(%arg0: i32, %arg1: i32) -> i32 {
    %c0_i32 = arith.constant 0 : i32
    %c0_i32_0 = arith.constant 0 : i32
    return %c0_i32 : i32
  }
  func.func @transform_4(%arg0: i32, %arg1: i32) -> i32 {
    %c0_i32 = arith.constant 0 : i32
    %c0_i32_0 = arith.constant 0 : i32
    return %c0_i32 : i32
  }
  func.func @transform_5(%arg0: i32, %arg1: i32) -> (i32, i32) {
    %c0_i32 = arith.constant 0 : i32
    return %arg0, %arg1 : i32, i32
  }
}

</mosaic_0001>

<bundles_post_ra>
// kernel: relationnet_forward.2
= control target key start
LH: loop header
LB: loop body
LE: loop exit
PB: predicated region body
PF: predicated region fallthrough
CT: control target
= control target key end

     0   :  { %vm51_vm0 = vcmask 523264   ;;  %vm192_vm1 = vcmask 261120   ;;  %s663_s1 = inlined_call_operand.vmem [shape: f32[64,32], index: 1, kind: input, shape index: {}]   ;;  %s664_s2 = inlined_call_operand.vmem [shape: f32[1,32], index: 2, kind: input, shape index: {}]   ;;  %s665_s0 = inlined_call_operand.vmem [shape: f32[136,64], index: 0, kind: input, shape index: {}]   ;;  %s666_s3 = inlined_call_operand.vmem [shape: f32[32,32], index: 3, kind: input, shape index: {}]   ;;  %s667_s4 = inlined_call_operand.vmem [shape: f32[32,32], index: 4, kind: input, shape index: {}]   ;;  %s668_s5 = inlined_call_operand.vmem [shape: f32[128,32], index: 5, kind: output, shape index: {0}]   ;;  %s669_s6 = inlined_call_operand.vmem [shape: f32[8,32], index: 6, kind: output, shape index: {1}]  }
   0x1   :  { %v46_v0 = vld [vmem:[%s663_s1 + $0x38] sm:$0xff]  ;;  %v45_v1 = vld [vmem:[%s663_s1 + $0x30] sm:$0xff]  ;;  %v44_v2 = vld [vmem:[%s663_s1 + $0x28] sm:$0xff] }
   0x2   :  { %111 = vmatpush.msra.mxu0 %v46_v0  ;;  %392 = vmatpush.msra.mxu3 %v46_v0  ;;  %v43_v3 = vld [vmem:[%s663_s1 + $0x20] sm:$0xff]  ;;  %v42_v4 = vld [vmem:[%s663_s1 + $0x18] sm:$0xff]  ;;  %v41_v5 = vld [vmem:[%s663_s1 + $0x10] sm:$0xff] }
   0x3   :  { %v40_v6 = vld [vmem:[%s663_s1 + $0x8] sm:$0xff]  ;;  %v39_v7 = vld [vmem:[%s663_s1] sm:$0xff]  ;;  %v24_v12 = vld [vmem:[%s665_s0 + $0x10] sm:$0xff] }
   0x4   :  { %112 = vmatpush.msra.mxu0 %v45_v1  ;;  %393 = vmatpush.msra.mxu3 %v45_v1  ;;  %v22_v8 = vld [vmem:[%s665_s0] sm:$0xff]  ;;  %v23_v10 = vld [vmem:[%s665_s0 + $0x8] sm:$0xff]  ;;  %v32_v13 = vld [vmem:[%s665_s0 + $0x50] sm:$0xff] }
   0x5   :  { %v30_v9 = vld [vmem:[%s665_s0 + $0x40] sm:$0xff]  ;;  %v31_v11 = vld [vmem:[%s665_s0 + $0x48] sm:$0xff]  ;;  %v25_v14 = vld [vmem:[%s665_s0 + $0x18] sm:$0xff] }
   0x6   :  { %113 = vmatpush.msra.mxu0 %v44_v2  ;;  %394 = vmatpush.msra.mxu3 %v44_v2  ;;  %v33_v15 = vld [vmem:[%s665_s0 + $0x58] sm:$0xff]  ;;  %v26_v16 = vld [vmem:[%s665_s0 + $0x20] sm:$0xff]  ;;  %v27_v19 = vld [vmem:[%s665_s0 + $0x28] sm:$0xff] }
   0x7   :  { %v34_v17 = vld [vmem:[%s665_s0 + $0x60] sm:$0xff]  ;;  %v191_v18 = vld [vmem:[%s666_s3 + $0x18] sm:$0xff]  ;;  %v35_v20 = vld [vmem:[%s665_s0 + $0x68] sm:$0xff] }
   0x8   :  { %114 = vmatpush.msra.mxu0 %v43_v3  ;;  %395 = vmatpush.msra.mxu3 %v43_v3  ;;  %v28_v21 = vld [vmem:[%s665_s0 + $0x30] sm:$0xff]  ;;  %v29_v23 = vld [vmem:[%s665_s0 + $0x38] sm:$0xff]  ;;  %v38_v25 = vld [vmem:[%s665_s0 + $0x80] sm:$0xff] }
   0x9   :  { %253 = vmatpush.msra.mxu1 %v191_v18  ;;  %400 = vmatpush.msra.mxu2 %v191_v18  ;;  %v36_v22 = vld [vmem:[%s665_s0 + $0x70] sm:$0xff]  ;;  %v37_v24 = vld [vmem:[%s665_s0 + $0x78] sm:$0xff]  ;;  %v189_v27 = vld [vmem:[%s666_s3 + $0x8] sm:$0xff] }
   0xa   :  { %115 = vmatpush.msra.mxu0 %v42_v4  ;;  %396 = vmatpush.msra.mxu3 %v42_v4  ;;  %v190_v26 = vld [vmem:[%s666_s3 + $0x10] sm:$0xff]  ;;  %v188_v28 = vld [vmem:[%s666_s3] sm:$0xff]  ;;  %v325_v29 = vld [vmem:[%s667_s4 + $0x18] sm:$0xff] }
   0xb   :  { %254 = vmatpush.msra.mxu1 %v190_v26  ;;  %401 = vmatpush.msra.mxu2 %v190_v26  ;;  %v550_v30 = vld [vmem:[%s664_s2] ss:$0 sm:$0xff]  ;;  %v324_v34 = vld [vmem:[%s667_s4 + $0x10] sm:$0xff]  ;;  %v323_v44 = vld [vmem:[%s667_s4 + $0x8] sm:$0xff] }
   0xc   :  { %116 = vmatpush.msra.mxu0 %v41_v5  ;;  %397 = vmatpush.msra.mxu3 %v41_v5  ;;  %v322_v52 = vld [vmem:[%s667_s4] sm:$0xff] }
   0xd   :  { %255 = vmatpush.msra.mxu1 %v189_v27  ;;  %402 = vmatpush.msra.mxu2 %v189_v27 }
   0xe   :  { %117 = vmatpush.msra.mxu0 %v40_v6  ;;  %398 = vmatpush.msra.mxu3 %v40_v6 }
   0xf   :  { %256 = vmatpush.msra.mxu1 %v188_v28  ;;  %403 = vmatpush.msra.mxu2 %v188_v28 }
  0x10   :  { %118 = vmatpush.msra.mxu0 %v39_v7  ;;  %399 = vmatpush.msra.mxu3 %v39_v7 }
  0x11   :  { %358 = vmatmul.msk.f32.vlgmr.msra.gmra.mxu0 %vm51_vm0, %v22_v8  ;;  %366 = vmatmul.msk.f32.vlgmr.msra.gmra.mxu3 %vm51_vm0, %v30_v9 }
  0x12   :  { %341 = vmatpush.msrb.mxu2 %v325_v29 }
  0x14   :  { %342 = vmatpush.msrb.mxu2 %v324_v34 }
  0x16   :  { %343 = vmatpush.msrb.mxu2 %v323_v44 }
  0x18   :  { %344 = vmatpush.msrb.mxu2 %v322_v52 }
  0x19   :  { %359 = vmatmul.msk.f32.gmra.mxu0 %vm51_vm0, %v23_v10  ;;  %367 = vmatmul.msk.f32.gmra.mxu3 %vm51_vm0, %v31_v11 }
  0x21   :  { %360 = vmatmul.msk.f32.gmra.mxu0 %vm51_vm0, %v24_v12  ;;  %368 = vmatmul.msk.f32.gmra.mxu3 %vm51_vm0, %v32_v13 }
  0x29   :  { %361 = vmatmul.msk.f32.gmra.mxu0 %vm51_vm0, %v25_v14  ;;  %369 = vmatmul.msk.f32.gmra.mxu3 %vm51_vm0, %v33_v15 }
  0x31   :  { %362 = vmatmul.msk.f32.gmra.mxu0 %vm51_vm0, %v26_v16  ;;  %370 = vmatmul.msk.f32.gmra.mxu3 %vm51_vm0, %v34_v17 }
  0x39   :  { %363 = vmatmul.msk.f32.gmra.mxu0 %vm51_vm0, %v27_v19  ;;  %371 = vmatmul.msk.f32.gmra.mxu3 %vm51_vm0, %v35_v20 }
  0x41   :  { %364 = vmatmul.msk.f32.gmra.mxu0 %vm51_vm0, %v28_v21  ;;  %372 = vmatmul.msk.f32.gmra.mxu3 %vm51_vm0, %v36_v22 }
  0x49   :  { %365 = vmatmul.msk.f32.gmra.mxu0 %vm51_vm0, %v29_v23  ;;  %373 = vmatmul.msk.f32.gmra.mxu3 %vm51_vm0, %v37_v24 }
  0x51   :  { %374 = vmatmul.msk.f32.gmra.mxu3 %vm51_vm0, %v38_v25 }
  0x8e   :  { %v120_v31 = vpop.f32.mrf.mxu0 }
  0x8f   :  { %v121_v32 = vadd.f32 %v550_v30, %v120_v31 }
  0x91   :  { %v171_v33 = vmax.f32 %v121_v32, 0.0 }
  0x93   :  { %375 = vmatmul.msk.f32.vlgmr.msra.gmra.mxu1 %vm192_vm1, %v171_v33 }
  0x94   :  { %v144_v35 = vpop.f32.mrf.mxu3 }
  0x95   :  { %v145_v14 = vadd.f32 %v550_v30, %v144_v35 }
  0x96   :  { %v123_v36 = vpop.f32.mrf.mxu0 }
  0x97   :  { %v124_v37 = vadd.f32 %v550_v30, %v123_v36  ;;  %v179_v17 = vmax.f32 %v145_v14, 0.0 }
  0x99   :  { %v172_v38 = vmax.f32 %v124_v37, 0.0 }
  0x9b   :  { %376 = vmatmul.msk.f32.gmra.mxu1 %vm192_vm1, %v172_v38 }
  0x9c   :  { %v147_v39 = vpop.f32.mrf.mxu3 }
  0x9d   :  { %v148_v40 = vadd.f32 %v550_v30, %v147_v39 }
  0x9e   :  { %v126_v41 = vpop.f32.mrf.mxu0 }
  0x9f   :  { %v180_v42 = vmax.f32 %v148_v40, 0.0  ;;  %v127_v43 = vadd.f32 %v550_v30, %v126_v41 }
  0xa1   :  { %v173_v45 = vmax.f32 %v127_v43, 0.0  ;;  %384 = vmatmul.msk.f32.vlgmr.msra.gmra.mxu2 %vm192_vm1, %v180_v42 }
  0xa3   :  { %377 = vmatmul.msk.f32.gmra.mxu1 %vm192_vm1, %v173_v45 }
  0xa4   :  { %v150_v46 = vpop.f32.mrf.mxu3 }
  0xa5   :  { %v151_v47 = vadd.f32 %v550_v30, %v150_v46 }
  0xa6   :  { %v129_v48 = vpop.f32.mrf.mxu0 }
  0xa7   :  { %v181_v49 = vmax.f32 %v151_v47, 0.0  ;;  %v130_v50 = vadd.f32 %v550_v30, %v129_v48 }
  0xa9   :  { %v174_v51 = vmax.f32 %v130_v50, 0.0  ;;  %385 = vmatmul.msk.f32.gmra.mxu2 %vm192_vm1, %v181_v49 }
  0xab   :  { %378 = vmatmul.msk.f32.gmra.mxu1 %vm192_vm1, %v174_v51 }
  0xac   :  { %v153_v53 = vpop.f32.mrf.mxu3 }
  0xad   :  { %v154_v54 = vadd.f32 %v550_v30, %v153_v53 }
  0xae   :  { %v132_v55 = vpop.f32.mrf.mxu0 }
  0xaf   :  { %v182_v56 = vmax.f32 %v154_v54, 0.0  ;;  %v133_v57 = vadd.f32 %v550_v30, %v132_v55 }
  0xb1   :  { %v175_v58 = vmax.f32 %v133_v57, 0.0  ;;  %386 = vmatmul.msk.f32.gmra.mxu2 %vm192_vm1, %v182_v56 }
  0xb3   :  { %379 = vmatmul.msk.f32.gmra.mxu1 %vm192_vm1, %v175_v58 }
  0xb4   :  { %v156_v59 = vpop.f32.mrf.mxu3 }
  0xb5   :  { %v157_v60 = vadd.f32 %v550_v30, %v156_v59 }
  0xb6   :  { %v135_v61 = vpop.f32.mrf.mxu0 }
  0xb7   :  { %v183_v62 = vmax.f32 %v157_v60, 0.0  ;;  %v136_v63 = vadd.f32 %v550_v30, %v135_v61 }
  0xb9   :  { %v176_v0 = vmax.f32 %v136_v63, 0.0  ;;  %387 = vmatmul.msk.f32.gmra.mxu2 %vm192_vm1, %v183_v62 }
  0xbb   :  { %380 = vmatmul.msk.f32.gmra.mxu1 %vm192_vm1, %v176_v0 }
  0xbc   :  { %v159_v1 = vpop.f32.mrf.mxu3 }
  0xbd   :  { %v160_v2 = vadd.f32 %v550_v30, %v159_v1 }
  0xbe   :  { %v138_v3 = vpop.f32.mrf.mxu0 }
  0xbf   :  { %v184_v4 = vmax.f32 %v160_v2, 0.0  ;;  %v139_v5 = vadd.f32 %v550_v30, %v138_v3 }
  0xc1   :  { %v177_v6 = vmax.f32 %v139_v5, 0.0  ;;  %388 = vmatmul.msk.f32.gmra.mxu2 %vm192_vm1, %v184_v4 }
  0xc3   :  { %381 = vmatmul.msk.f32.gmra.mxu1 %vm192_vm1, %v177_v6 }
  0xc4   :  { %v162_v7 = vpop.f32.mrf.mxu3 }
  0xc5   :  { %v163_v8 = vadd.f32 %v550_v30, %v162_v7 }
  0xc6   :  { %v141_v9 = vpop.f32.mrf.mxu0 }
  0xc7   :  { %v185_v10 = vmax.f32 %v163_v8, 0.0  ;;  %v142_v11 = vadd.f32 %v550_v30, %v141_v9 }
  0xc9   :  { %v178_v12 = vmax.f32 %v142_v11, 0.0  ;;  %389 = vmatmul.msk.f32.gmra.mxu2 %vm192_vm1, %v185_v10 }
  0xcb   :  { %382 = vmatmul.msk.f32.gmra.mxu1 %vm192_vm1, %v178_v12 }
  0xcc   :  { %v165_v13 = vpop.f32.mrf.mxu3 }
  0xcd   :  { %v166_v15 = vadd.f32 %v550_v30, %v165_v13 }
  0xcf   :  { %v186_v16 = vmax.f32 %v166_v15, 0.0 }
  0xd1   :  { %390 = vmatmul.msk.f32.gmra.mxu2 %vm192_vm1, %v186_v16 }
  0xd3   :  { %383 = vmatmul.msk.f32.gmra.mxu1 %vm192_vm1, %v179_v17 }
  0xd4   :  { %v168_v18 = vpop.f32.mrf.mxu3 }
  0xd5   :  { %v169_v19 = vadd.f32 %v550_v30, %v168_v18 }
  0xd7   :  { %v187_v20 = vmax.f32 %v169_v19, 0.0 }
  0xd9   :  { %391 = vmatmul.msk.f32.vlgmr.msrb.gmra.mxu2 %vm192_vm1, %v187_v20 }
 0x110   :  { %v258_v21 = vpop.f32.mrf.mxu1 }
 0x111   :  { %306 = vst.msk [vmem:[%s668_s5] sm:$0xff] %vm192_vm1, %v258_v21 }
 0x118   :  { %v261_v22 = vpop.f32.mrf.mxu1 }
 0x119   :  { %307 = vst.msk [vmem:[%s668_s5 + $0x8] sm:$0xff] %vm192_vm1, %v261_v22 }
 0x120   :  { %v264_v23 = vpop.f32.mrf.mxu1 }
 0x121   :  { %308 = vst.msk [vmem:[%s668_s5 + $0x10] sm:$0xff] %vm192_vm1, %v264_v23 }
 0x124   :  { %v285_v24 = vpop.f32.mrf.mxu2 }
 0x125   :  { %315 = vst.msk [vmem:[%s668_s5 + $0x48] sm:$0xff] %vm192_vm1, %v285_v24 }
 0x128   :  { %v267_v25 = vpop.f32.mrf.mxu1 }
 0x129   :  { %309 = vst.msk [vmem:[%s668_s5 + $0x18] sm:$0xff] %vm192_vm1, %v267_v25 }
 0x12c   :  { %v288_v26 = vpop.f32.mrf.mxu2 }
 0x12d   :  { %316 = vst.msk [vmem:[%s668_s5 + $0x50] sm:$0xff] %vm192_vm1, %v288_v26 }
 0x130   :  { %v270_v27 = vpop.f32.mrf.mxu1 }
 0x131   :  { %310 = vst.msk [vmem:[%s668_s5 + $0x20] sm:$0xff] %vm192_vm1, %v270_v27 }
 0x134   :  { %v291_v28 = vpop.f32.mrf.mxu2 }
 0x135   :  { %317 = vst.msk [vmem:[%s668_s5 + $0x58] sm:$0xff] %vm192_vm1, %v291_v28 }
 0x138   :  { %v273_v29 = vpop.f32.mrf.mxu1 }
 0x139   :  { %311 = vst.msk [vmem:[%s668_s5 + $0x28] sm:$0xff] %vm192_vm1, %v273_v29 }
 0x13c   :  { %v294_v30 = vpop.f32.mrf.mxu2 }
 0x13d   :  { %318 = vst.msk [vmem:[%s668_s5 + $0x60] sm:$0xff] %vm192_vm1, %v294_v30 }
 0x140   :  { %v276_v31 = vpop.f32.mrf.mxu1 }
 0x141   :  { %312 = vst.msk [vmem:[%s668_s5 + $0x30] sm:$0xff] %vm192_vm1, %v276_v31 }
 0x144   :  { %v297_v32 = vpop.f32.mrf.mxu2 }
 0x145   :  { %319 = vst.msk [vmem:[%s668_s5 + $0x68] sm:$0xff] %vm192_vm1, %v297_v32 }
 0x148   :  { %v279_v33 = vpop.f32.mrf.mxu1 }
 0x149   :  { %313 = vst.msk [vmem:[%s668_s5 + $0x38] sm:$0xff] %vm192_vm1, %v279_v33 }
 0x14c   :  { %v300_v34 = vpop.f32.mrf.mxu2 }
 0x14d   :  { %320 = vst.msk [vmem:[%s668_s5 + $0x70] sm:$0xff] %vm192_vm1, %v300_v34 }
 0x150   :  { %v282_v35 = vpop.f32.mrf.mxu1 }
 0x151   :  { %314 = vst.msk [vmem:[%s668_s5 + $0x40] sm:$0xff] %vm192_vm1, %v282_v35 }
 0x154   :  { %v303_v36 = vpop.f32.mrf.mxu2 }
 0x155   :  { %321 = vst.msk [vmem:[%s668_s5 + $0x78] sm:$0xff] %vm192_vm1, %v303_v36 }
 0x15c   :  { %v346_v37 = vpop.f32.mrf.mxu2 }
 0x15d   :  { %349 = vst.msk [vmem:[%s669_s6] sm:$0xff] %vm192_vm1, %v346_v37 }

// kernel: relationnet_forward.3
= control target key start
LH: loop header
LB: loop body
LE: loop exit
PB: predicated region body
PF: predicated region fallthrough
CT: control target
= control target key end

     0   :  { %11 = vsyncpa [#allocation5], 0  ;;  %s1035_s0 = inlined_call_operand.vmem [shape: f32[8,32], index: 0, kind: input, shape index: {}]   ;;  %s1036_s1 = inlined_call_operand.vmem [shape: f32[32,128], index: 1, kind: input, shape index: {}]   ;;  %s1037_s2 = inlined_call_operand.vmem [shape: f32[32], index: 2, kind: input, shape index: {}]   ;;  %s1038_s3 = inlined_call_operand.vmem [shape: f32[32], index: 3, kind: input, shape index: {}]   ;;  %s1039_s4 = inlined_call_operand.<no memory space> [shape: f32[1], index: 4, kind: input, shape index: {}]   ;;  %s1040_s5 = inlined_call_operand.hbm [shape: f32[8,128], index: 5, kind: output, shape index: {}]  }
   0x1   :  { %12 = vsyncpa [#allocation7], 0 }
   0x2   :  { %13 = vsyncpa [#allocation4], 0  ;;  %s23_s20 = sshll.u32 %s1037_s2, 4  ;;  %s32_s23 = sshll.u32 %s1038_s3, 4  ;;  %s24_s20 = int_to_ptr.vmem [resolvable:$true] %s23_s20  ;;  %s33_s23 = int_to_ptr.vmem [resolvable:$true] %s32_s23 }
   0x3   :  { %s707_s24 = smov [#allocation3]   ;;  %s708_s25 = smov [#allocation6]  }
   0x4   :  { %26 = dma.vmem_to_smem %s24_s20, 16, %s707_s24, [#allocation5]  }
   0x5   :  { %35 = dma.vmem_to_smem %s33_s23, 16, %s708_s25, [#allocation7]  }
   0x6   :  { %701 = dma.done.wait [#allocation5], 16  }
   0x7   :  { %702 = vsyncadd [#allocation5], 4294967280 }
   0x8   :  { %703 = dma.done.wait [#allocation7], 16  }
   0x9   :  { %704 = vsyncadd [#allocation7], 4294967280 }
   0xa   :  { %46 = sfence }
   0xb   :  { %v781_v0 = vld [vmem:[%s1035_s0] sm:$0xff]  ;;  %v709_v1 = vmov 2   ;;  %v710_v2 = vmov 0   ;;  %v711_v3 = vmov 4   ;;  %v712_v4 = vmov 3   ;;  %s59_s0 = sld [smem:[#allocation3]] }
   0xc   :  { %622 = vset.pattern.permute.xlu1 %v709_v1  ;;  %620 = vset.pattern.permute.xlu0 %v710_v2  ;;  %v713_v5 = vmov 1   ;;  %v714_v6 = vmov 5   ;;  %v715_v7 = vmov 6   ;;  %v716_v8 = vmov 8   ;;  %v818_v35 = vld [vmem:[%s1036_s1] sm:$0xff]  ;;  %s525_s28 = sld [smem:[#allocation3 + $0x2]] }
   0xd   :  { %82 = vperm.xlu1 %622, %v781_v0   ;;  %54 = vperm.xlu0 %620, %v781_v0   ;;  %v717_v9 = vmov 7   ;;  %v718_v10 = vmov 9   ;;  %v719_v11 = vmov 13   ;;  %v720_v12 = vmov 10   ;;  %s523_s29 = sld [smem:[#allocation3 + $0x1]] }
   0xe   :  { %624 = vset.pattern.permute.xlu2 %v711_v3  ;;  %v721_v13 = vmov 11   ;;  %v722_v14 = vmov 18   ;;  %v723_v15 = vmov 12   ;;  %v724_v16 = vmov 14   ;;  %s63_s30 = sld [smem:[#allocation6]] }
   0xf   :  { %110 = vperm.xlu2 %624, %v781_v0   ;;  %v725_v17 = vmov 23   ;;  %v726_v18 = vmov 15   ;;  %v727_v19 = vmov 16   ;;  %v728_v20 = vmov 17   ;;  %s527_s6 = sld [smem:[#allocation3 + $0x3]] }
  0x10   :  { %v729_v21 = vmov 28   ;;  %v730_v22 = vmov 19   ;;  %v731_v23 = vmov 20   ;;  %v732_v24 = vmov 31   ;;  %s822_s7 = sld [smem:[#allocation6 + $0x1]] }
  0x11   :  { %v733_v25 = vmov 21   ;;  %v734_v26 = vmov 22   ;;  %v735_v27 = vmov 24   ;;  %v736_v28 = vmov 25   ;;  %s825_s8 = sld [smem:[#allocation6 + $0x2]] }
  0x12   :  { %v737_v29 = vmov 26   ;;  %v738_v30 = vmov 27   ;;  %v739_v31 = vmov 29   ;;  %v740_v33 = vmov 30   ;;  %s828_s9 = sld [smem:[#allocation3 + $0x4]] }
  0x13   :  { %v57_v36 = vperm.slane %v818_v35, 0  ;;  %v85_v40 = vperm.slane %v818_v35, 2  ;;  %v60_v41 = vstv %s59_s0  ;;  %v71_v43 = vperm.slane %v818_v35, 1  ;;  %s830_s10 = sld [smem:[#allocation3 + $0x5]] }
  0x14   :  { %v99_v46 = vperm.slane %v818_v35, 3  ;;  %v88_v47 = vstv %s525_s28  ;;  %v74_v49 = vstv %s523_s29  ;;  %v64_v54 = vstv %s63_s30  ;;  %s833_s11 = sld [smem:[#allocation6 + $0x3]] }
  0x15   :  { %623 = vset.pattern.permute.xlu1 %v712_v4  ;;  %621 = vset.pattern.permute.xlu0 %v713_v5  ;;  %v113_v55 = vperm.slane %v818_v35, 4  ;;  %v102_v57 = vstv %s527_s6  ;;  %v127_v60 = vperm.slane %v818_v35, 5  ;;  %s837_s12 = sld [smem:[#allocation3 + $0x6]] }
  0x16   :  { %96 = vperm.xlu1 %623, %v781_v0   ;;  %68 = vperm.xlu0 %621, %v781_v0   ;;  %v78_v59 = vstv %s822_s7  ;;  %s841_s13 = sld [smem:[#allocation6 + $0x4]] }
  0x17   :  { %625 = vset.pattern.permute.xlu2 %v714_v6  ;;  %v92_v2 = vstv %s825_s8  ;;  %s844_s14 = sld [smem:[#allocation3 + $0x7]] }
  0x18   :  { %124 = vperm.xlu2 %625, %v781_v0   ;;  %v116_v3 = vstv %s828_s9  ;;  %s847_s15 = sld [smem:[#allocation6 + $0x5]] }
  0x19   :  { %s851_s16 = sld [smem:[#allocation6 + $0x6]] }
  0x1a   :  { %s859_s19 = sld [smem:[#allocation3 + $0x8]] }
  0x1b   :  { %s861_s20 = sld [smem:[#allocation6 + $0x7]] }
  0x1c   :  { %s865_s21 = sld [smem:[#allocation3 + $0x9]] }
  0x1d   :  { %s870_s22 = sld [smem:[#allocation3 + $0xa]] }
  0x1e   :  { %626 = vset.pattern.permute.xlu1 %v715_v7  ;;  %628 = vset.pattern.permute.xlu0 %v716_v8  ;;  %v141_v7 = vperm.slane %v818_v35, 6  ;;  %s872_s23 = sld [smem:[#allocation6 + $0x8]] }
  0x1f   :  { %138 = vperm.xlu1 %626, %v781_v0   ;;  %166 = vperm.xlu0 %628, %v781_v0   ;;  %s876_s24 = sld [smem:[#allocation3 + $0xb]] }
  0x20   :  { %627 = vset.pattern.permute.xlu2 %v717_v9  ;;  %v130_v9 = vstv %s830_s10  ;;  %s881_s25 = sld [smem:[#allocation6 + $0x9]] }
  0x21   :  { %152 = vperm.xlu2 %627, %v781_v0   ;;  %s884_s26 = sld [smem:[#allocation3 + $0xc]] }
  0x22   :  { %s887_s27 = sld [smem:[#allocation6 + $0xa]] }
  0x23   :  { %s889_s0 = sld [smem:[#allocation6 + $0xb]] }
  0x24   :  { %s894_s2 = sld [smem:[#allocation3 + $0xd]] }
  0x25   :  { %s898_s3 = sld [smem:[#allocation3 + $0xe]] }
  0x26   :  { %s901_s28 = sld [smem:[#allocation6 + $0xc]] }
  0x27   :  { %629 = vset.pattern.permute.xlu1 %v718_v10  ;;  %633 = vset.pattern.permute.xlu0 %v719_v11  ;;  %s905_s29 = sld [smem:[#allocation3 + $0xf]] }
  0x28   :  { %180 = vperm.xlu1 %629, %v781_v0   ;;  %236 = vperm.xlu0 %633, %v781_v0   ;;  %s907_s30 = sld [smem:[#allocation6 + $0xd]] }
  0x29   :  { %630 = vset.pattern.permute.xlu2 %v720_v12  ;;  %s911_s6 = sld [smem:[#allocation3 + $0x10]] }
  0x2a   :  { %194 = vperm.xlu2 %630, %v781_v0   ;;  %s915_s7 = sld [smem:[#allocation6 + $0xe]] }
  0x2b   :  { %s923_s10 = sld [smem:[#allocation3 + $0x11]] }
  0x2c   :  { %s947_s17 = sld [smem:[#allocation3 + $0x14]] }
  0x2d   :  { %s951_s18 = sld [smem:[#allocation6 + $0x13]] }
  0x2e   :  { %s1016_s8 = sld [smem:[#allocation3 + $0x1d]] }
  0x2f   :  { %s1019_s9 = sld [smem:[#allocation3 + $0x1e]] }
  0x30   :  { %631 = vset.pattern.permute.xlu1 %v721_v13  ;;  %638 = vset.pattern.permute.xlu0 %v722_v14  ;;  %v106_v14 = vstv %s833_s11  ;;  %s927_s11 = sld [smem:[#allocation6 + $0xf]] }
  0x31   :  { %208 = vperm.xlu1 %631, %v781_v0   ;;  %306 = vperm.xlu0 %638, %v781_v0  }
  0x32   :  { %632 = vset.pattern.permute.xlu2 %v723_v15  ;;  %v155_v15 = vperm.slane %v818_v35, 7 }
  0x33   :  { %222 = vperm.xlu2 %632, %v781_v0  }
  0x39   :  { %634 = vset.pattern.permute.xlu1 %v724_v16  ;;  %643 = vset.pattern.permute.xlu0 %v725_v17 }
  0x3a   :  { %250 = vperm.xlu1 %634, %v781_v0   ;;  %376 = vperm.xlu0 %643, %v781_v0  }
  0x3b   :  { %635 = vset.pattern.permute.xlu2 %v726_v18 }
  0x3c   :  { %264 = vperm.xlu2 %635, %v781_v0  }
  0x42   :  { %636 = vset.pattern.permute.xlu1 %v727_v19  ;;  %648 = vset.pattern.permute.xlu0 %v729_v21  ;;  %v856_v19 = vld [vmem:[%s1036_s1 + $0x8] sm:$0xff] }
  0x43   :  { %278 = vperm.xlu1 %636, %v781_v0   ;;  %446 = vperm.xlu0 %648, %v781_v0  }
  0x44   :  { %637 = vset.pattern.permute.xlu2 %v728_v20  ;;  %v144_v20 = vstv %s837_s12  ;;  %s930_s12 = sld [smem:[#allocation3 + $0x12]] }
  0x45   :  { %292 = vperm.xlu2 %637, %v781_v0  }
  0x4b   :  { %639 = vset.pattern.permute.xlu1 %v730_v22  ;;  %652 = vset.pattern.permute.xlu0 %v732_v24 }
  0x4c   :  { %320 = vperm.xlu1 %639, %v781_v0  }
  0x4d   :  { %640 = vset.pattern.permute.xlu2 %v731_v23  ;;  %v120_v23 = vstv %s841_s13  ;;  %s934_s13 = sld [smem:[#allocation6 + $0x10]] }
  0x4e   :  { %334 = vperm.xlu2 %640, %v781_v0  }
  0x54   :  { %641 = vset.pattern.permute.xlu1 %v733_v25  ;;  %v169_v25 = vperm.slane %v856_v19, 0 }
  0x55   :  { %348 = vperm.xlu1 %641, %v781_v0  }
  0x56   :  { %642 = vset.pattern.permute.xlu2 %v734_v26 }
  0x57   :  { %362 = vperm.xlu2 %642, %v781_v0  }
  0x5d   :  { %644 = vset.pattern.permute.xlu1 %v735_v27 }
  0x5e   :  { %390 = vperm.xlu1 %644, %v781_v0  }
  0x5f   :  { %645 = vset.pattern.permute.xlu2 %v736_v28 }
  0x60   :  { %404 = vperm.xlu2 %645, %v781_v0  }
  0x66   :  { %646 = vset.pattern.permute.xlu1 %v737_v29  ;;  %v158_v29 = vstv %s844_s14  ;;  %s938_s14 = sld [smem:[#allocation3 + $0x13]] }
  0x67   :  { %418 = vperm.xlu1 %646, %v781_v0  }
  0x68   :  { %647 = vset.pattern.permute.xlu2 %v738_v30  ;;  %v134_v30 = vstv %s847_s15  ;;  %s941_s15 = sld [smem:[#allocation6 + $0x11]] }
  0x69   :  { %432 = vperm.xlu2 %647, %v781_v0   ;;  %v111_v32 = vpop.permute.xlu2 %110 }
  0x6f   :  { %649 = vset.pattern.permute.xlu1 %v739_v31 }
  0x70   :  { %460 = vperm.xlu1 %649, %v781_v0  }
  0x71   :  { %650 = vset.pattern.permute.xlu2 %v740_v33 }
  0x72   :  { %474 = vperm.xlu2 %650, %v781_v0   ;;  %v125_v34 = vpop.permute.xlu2 %124 }
  0x73   :  { %v128_v6 = vadd.f32 %v127_v60, %v125_v34  ;;  %v183_v34 = vperm.slane %v856_v19, 1 }
  0x75   :  { %v131_v17 = vadd.f32 %v130_v9, %v128_v6 }
  0x77   :  { %v132_v27 = vmax.f32 %v131_v17, 0.0 }
  0x78   :  { %651 = vset.pattern.permute.xlu1 %v732_v24 }
  0x79   :  { %488 = vperm.xlu1 %651, %v781_v0   ;;  %v114_v0 = vadd.f32 %v113_v55, %v111_v32  ;;  %v200_v55 = vstv %s870_s22  ;;  %s965_s22 = sld [smem:[#allocation6 + $0x15]] }
  0x7b   :  { %v153_v44 = vpop.permute.xlu2 %152  ;;  %v117_v12 = vadd.f32 %v116_v3, %v114_v0  ;;  %v239_v3 = vperm.slane %v856_v19, 5 }
  0x7c   :  { %v156_v24 = vadd.f32 %v155_v15, %v153_v44  ;;  %v197_v44 = vperm.slane %v856_v19, 2 }
  0x7d   :  { %v118_v21 = vmax.f32 %v117_v12, 0.0  ;;  %v253_v12 = vperm.slane %v856_v19, 6 }
  0x7f   :  { %v83_v37 = vpop.permute.xlu1 %82  ;;  %v55_v38 = vpop.permute.xlu0 %54  ;;  %v121_v33 = vmul.f32 %v120_v23, %v118_v21  ;;  %v242_v21 = vstv %s894_s2  ;;  %s988_s2 = sld [smem:[#allocation6 + $0x17]] }
  0x80   :  { %v58_v39 = vadd.f32 %v57_v36, %v55_v38  ;;  %v86_v45 = vadd.f32 %v85_v40, %v83_v37  ;;  %v159_v36 = vadd.f32 %v158_v29, %v156_v24  ;;  %v135_v38 = vmul.f32 %v134_v30, %v132_v27 }
  0x81   :  { %v256_v27 = vstv %s898_s3  ;;  %s995_s3 = sld [smem:[#allocation3 + $0x1a]] }
  0x82   :  { %v61_v42 = vadd.f32 %v60_v41, %v58_v39  ;;  %v89_v53 = vadd.f32 %v88_v47, %v86_v45  ;;  %v148_v41 = vstv %s851_s16  ;;  %v162_v45 = vstv %s861_s20  ;;  %s943_s16 = sld [smem:[#allocation6 + $0x12]] }
  0x83   :  { %v186_v47 = vstv %s865_s21  ;;  %s958_s20 = sld [smem:[#allocation3 + $0x16]] }
  0x84   :  { %v62_v51 = vmax.f32 %v61_v42, 0.0  ;;  %v90_v63 = vmax.f32 %v89_v53, 0.0  ;;  %v195_v5 = vpop.permute.xlu2 %194  ;;  %v172_v42 = vstv %s859_s19  ;;  %s955_s19 = sld [smem:[#allocation3 + $0x15]] }
  0x85   :  { %v198_v53 = vadd.f32 %v197_v44, %v195_v5  ;;  %s962_s21 = sld [smem:[#allocation6 + $0x14]] }
  0x86   :  { %v65_v61 = vmul.f32 %v64_v54, %v62_v51  ;;  %v93_v11 = vmul.f32 %v92_v2, %v90_v63  ;;  %v211_v51 = vperm.slane %v856_v19, 3  ;;  %v214_v63 = vstv %s876_s24  ;;  %s973_s24 = sld [smem:[#allocation3 + $0x18]] }
  0x87   :  { %v190_v2 = vstv %s881_s25  ;;  %s976_s25 = sld [smem:[#allocation6 + $0x16]] }
  0x88   :  { %v97_v48 = vpop.permute.xlu1 %96  ;;  %v69_v50 = vpop.permute.xlu0 %68 }
  0x89   :  { %v72_v52 = vadd.f32 %v71_v43, %v69_v50  ;;  %v100_v56 = vadd.f32 %v99_v46, %v97_v48  ;;  %v160_v46 = vmax.f32 %v159_v36, 0.0  ;;  %v270_v36 = vstv %s905_s29  ;;  %s1001_s29 = sld [smem:[#allocation6 + $0x19]] }
  0x8b   :  { %v75_v58 = vadd.f32 %v74_v49, %v72_v52  ;;  %v103_v1 = vadd.f32 %v102_v57, %v100_v56  ;;  %v163_v54 = vmul.f32 %v162_v45, %v160_v46 }
  0x8d   :  { %v76_v62 = vmax.f32 %v75_v58, 0.0  ;;  %v104_v13 = vmax.f32 %v103_v1, 0.0  ;;  %v223_v32 = vpop.permute.xlu2 %222  ;;  %v201_v1 = vadd.f32 %v200_v55, %v198_v53  ;;  %v298_v55 = vstv %s923_s10  ;;  %s578_s10 = sld [smem:[#allocation6 + $0x1c]] }
  0x8f   :  { %v79_v4 = vmul.f32 %v78_v59, %v76_v62  ;;  %v107_v22 = vmul.f32 %v106_v14, %v104_v13  ;;  %v176_v62 = vstv %s872_s23  ;;  %v204_v13 = vstv %s887_s27  ;;  %s968_s23 = sld [smem:[#allocation3 + $0x17]] }
  0x91   :  { %v80_v8 = vadd.f32 %v79_v4, %v65_v61  ;;  %v139_v10 = vpop.permute.xlu1 %138  ;;  %v167_v31 = vpop.permute.xlu0 %166  ;;  %v225_v61 = vperm.slane %v856_v19, 4 }
  0x92   :  { %v142_v18 = vadd.f32 %v141_v7, %v139_v10  ;;  %v170_v40 = vadd.f32 %v169_v25, %v167_v31 }
  0x93   :  { %v94_v16 = vadd.f32 %v93_v11, %v80_v8  ;;  %v226_v7 = vadd.f32 %v225_v61, %v223_v32  ;;  %v228_v8 = vstv %s884_s26  ;;  %v202_v11 = vmax.f32 %v201_v1, 0.0 }
  0x94   :  { %v145_v28 = vadd.f32 %v144_v20, %v142_v18  ;;  %v173_v50 = vadd.f32 %v172_v42, %v170_v40  ;;  %v218_v20 = vstv %s889_s0  ;;  %v232_v32 = vstv %s901_s28  ;;  %s984_s0 = sld [smem:[#allocation3 + $0x19]] }
  0x95   :  { %v108_v26 = vadd.f32 %v107_v22, %v94_v16  ;;  %v229_v16 = vadd.f32 %v228_v8, %v226_v7  ;;  %v205_v24 = vmul.f32 %v204_v13, %v202_v11  ;;  %v284_v42 = vstv %s911_s6  ;;  %s998_s28 = sld [smem:[#allocation3 + $0x1b]] }
  0x96   :  { %v146_v39 = vmax.f32 %v145_v28, 0.0  ;;  %v265_v57 = vpop.permute.xlu2 %264  ;;  %v174_v59 = vmax.f32 %v173_v50, 0.0  ;;  %v920_v28 = vld [vmem:[%s1036_s1 + $0x10] sm:$0xff]  ;;  %v288_v1 = vstv %s934_s13  ;;  %v326_v7 = vstv %s938_s14  ;;  %s1007_s6 = sld [smem:[#allocation3 + $0x1c]] }
  0x97   :  { %v122_v37 = vadd.f32 %v121_v33, %v108_v26  ;;  %v267_v26 = vperm.slane %v856_v19, 7  ;;  %v230_v30 = vmax.f32 %v229_v16, 0.0  ;;  %v281_v19 = vperm.slane %v920_v28, 0  ;;  %s583_s13 = sld [smem:[#allocation3 + $0x1f]] }
  0x98   :  { %v149_v49 = vmul.f32 %v148_v41, %v146_v39  ;;  %v177_v5 = vmul.f32 %v176_v62, %v174_v59  ;;  %v295_v40 = vperm.slane %v920_v28, 1  ;;  %v246_v41 = vstv %s907_s30  ;;  %s1003_s30 = sld [smem:[#allocation6 + $0x1a]] }
  0x99   :  { %v136_v48 = vadd.f32 %v135_v38, %v122_v37  ;;  %v233_v38 = vmul.f32 %v232_v32, %v230_v30  ;;  %v302_v11 = vstv %s941_s15  ;;  %v316_v16 = vstv %s943_s16  ;;  %s584_s14 = sld [smem:[#allocation6 + $0x1f]] }
  0x9a   :  { %v181_v35 = vpop.permute.xlu1 %180  ;;  %v237_v9 = vpop.permute.xlu0 %236 }
  0x9b   :  { %v184_v43 = vadd.f32 %v183_v34, %v181_v35  ;;  %v150_v58 = vadd.f32 %v149_v49, %v136_v48  ;;  %v240_v17 = vadd.f32 %v239_v3, %v237_v9  ;;  %v268_v35 = vadd.f32 %v267_v26, %v265_v57 }
  0x9c   :  { %v309_v48 = vperm.slane %v920_v28, 2 }
  0x9d   :  { %v187_v52 = vadd.f32 %v186_v47, %v184_v43  ;;  %v164_v4 = vadd.f32 %v163_v54, %v150_v58  ;;  %v243_v31 = vadd.f32 %v242_v21, %v240_v17  ;;  %v271_v45 = vadd.f32 %v270_v36, %v268_v35 }
  0x9e   :  { %v260_v47 = vstv %s915_s7  ;;  %v274_v58 = vstv %s927_s11  ;;  %v368_v35 = vstv %s958_s20  ;;  %s1014_s7 = sld [smem:[#allocation6 + $0x1b]] }
  0x9f   :  { %v188_v0 = vmax.f32 %v187_v52, 0.0  ;;  %v178_v14 = vadd.f32 %v177_v5, %v164_v4  ;;  %v293_v22 = vpop.permute.xlu2 %292  ;;  %v244_v39 = vmax.f32 %v243_v31, 0.0  ;;  %v272_v57 = vmax.f32 %v271_v45, 0.0  ;;  %s580_s11 = sld [smem:[#allocation6 + $0x1d]] }
  0xa0   :  { %v296_v53 = vadd.f32 %v295_v40, %v293_v22  ;;  %v337_v5 = vperm.slane %v920_v28, 4  ;;  %v351_v22 = vperm.slane %v920_v28, 5  ;;  %v344_v40 = vstv %s962_s21  ;;  %s512_s21 = sshll.u32 %s1040_s5, 4  ;;  %s513_s21 = int_to_ptr.hbm [resolvable:$true] %s512_s21 }
  0xa1   :  { %v191_v10 = vmul.f32 %v190_v2, %v188_v0  ;;  %v312_v0 = vstv %s930_s12  ;;  %v275_v3 = vmul.f32 %v274_v58, %v272_v57  ;;  %v358_v45 = vstv %s965_s22  ;;  %s582_s12 = sld [smem:[#allocation6 + $0x1e]] }
  0xa3   :  { %v209_v56 = vpop.permute.xlu1 %208  ;;  %v192_v23 = vadd.f32 %v191_v10, %v178_v14  ;;  %v307_v54 = vpop.permute.xlu0 %306 }
  0xa4   :  { %v212_v60 = vadd.f32 %v211_v51, %v209_v56  ;;  %v247_v51 = vmul.f32 %v246_v41, %v244_v39  ;;  %v310_v59 = vadd.f32 %v309_v48, %v307_v54  ;;  %v981_v39 = vld [vmem:[%s1036_s1 + $0x18] sm:$0xff]  ;;  %s992_s1 = sld [smem:[#allocation6 + $0x18]]  ;;  %v396_v54 = vstv %s973_s24 }
  0xa5   :  { %v206_v33 = vadd.f32 %v205_v24, %v192_v23  ;;  %v365_v23 = vperm.slane %v920_v28, 6 }
  0xa6   :  { %v215_v6 = vadd.f32 %v214_v63, %v212_v60  ;;  %v323_v60 = vperm.slane %v920_v28, 3  ;;  %v299_v63 = vadd.f32 %v298_v55, %v296_v53 }
  0xa8   :  { %v216_v15 = vmax.f32 %v215_v6, 0.0  ;;  %v335_v49 = vpop.permute.xlu2 %334  ;;  %v313_v6 = vadd.f32 %v312_v0, %v310_v59  ;;  %v300_v10 = vmax.f32 %v299_v63, 0.0 }
  0xaa   :  { %v219_v29 = vmul.f32 %v218_v20, %v216_v15  ;;  %v338_v15 = vadd.f32 %v337_v5, %v335_v49  ;;  %v314_v17 = vmax.f32 %v313_v6, 0.0  ;;  %v303_v21 = vmul.f32 %v302_v11, %v300_v10 }
  0xab   :  { %v421_v6 = vperm.slane %v981_v39, 2  ;;  %v449_v11 = vperm.slane %v981_v39, 4 }
  0xac   :  { %v251_v18 = vpop.permute.xlu1 %250  ;;  %v220_v37 = vadd.f32 %v219_v29, %v206_v33  ;;  %v317_v26 = vmul.f32 %v316_v16, %v314_v17  ;;  %v354_v29 = vstv %s955_s19 }
  0xad   :  { %v254_v25 = vadd.f32 %v253_v12, %v251_v18  ;;  %v340_v18 = vstv %s947_s17  ;;  %s741_s17 = smov [#allocation8]  }
  0xae   :  { %v234_v50 = vadd.f32 %v233_v38, %v220_v37 }
  0xaf   :  { %v257_v34 = vadd.f32 %v256_v27, %v254_v25  ;;  %v341_v25 = vadd.f32 %v340_v18, %v338_v15  ;;  %v330_v27 = vstv %s951_s18  ;;  %s510_s18 = sshll.u32 %s741_s17, 4  ;;  %s511_s18 = int_to_ptr.vmem [resolvable:$true] %s510_s18 }
  0xb0   :  { %v248_v61 = vadd.f32 %v247_v51, %v234_v50  ;;  %v407_v50 = vperm.slane %v981_v39, 1 }
  0xb1   :  { %v258_v44 = vmax.f32 %v257_v34, 0.0  ;;  %v363_v12 = vpop.permute.xlu2 %362  ;;  %v379_v34 = vperm.slane %v920_v28, 7  ;;  %v342_v37 = vmax.f32 %v341_v25, 0.0  ;;  %v428_v25 = vstv %s1003_s30 }
  0xb2   :  { %v366_v33 = vadd.f32 %v365_v23, %v363_v12  ;;  %v424_v12 = vstv %s995_s3 }
  0xb3   :  { %v261_v56 = vmul.f32 %v260_v47, %v258_v44  ;;  %v393_v47 = vperm.slane %v981_v39, 0  ;;  %v345_v49 = vmul.f32 %v344_v40, %v342_v37 }
  0xb5   :  { %v279_v43 = vpop.permute.xlu1 %278  ;;  %v262_v2 = vadd.f32 %v261_v56, %v248_v61  ;;  %v372_v56 = vstv %s976_s25  ;;  %v410_v61 = vstv %s984_s0 }
  0xb6   :  { %v282_v46 = vadd.f32 %v281_v19, %v279_v43  ;;  %v377_v19 = vpop.permute.xlu0 %376  ;;  %v369_v43 = vadd.f32 %v368_v35, %v366_v33 }
  0xb7   :  { %v276_v13 = vadd.f32 %v275_v3, %v262_v2  ;;  %v380_v44 = vadd.f32 %v379_v34, %v377_v19  ;;  %v386_v2 = vstv %s988_s2 }
  0xb8   :  { %v285_v52 = vadd.f32 %v284_v42, %v282_v46  ;;  %v382_v46 = vstv %s968_s23 }
  0xb9   :  { %v383_v53 = vadd.f32 %v382_v46, %v380_v44  ;;  %v456_v46 = vstv %s578_s10 }
  0xba   :  { %v286_v62 = vmax.f32 %v285_v52, 0.0  ;;  %v405_v28 = vpop.permute.xlu2 %404  ;;  %v370_v52 = vmax.f32 %v369_v43, 0.0 }
  0xbb   :  { %v408_v59 = vadd.f32 %v407_v50, %v405_v28  ;;  %v384_v0 = vmax.f32 %v383_v53, 0.0  ;;  %v491_v53 = vperm.slane %v981_v39, 7 }
  0xbc   :  { %v289_v9 = vmul.f32 %v288_v1, %v286_v62  ;;  %v373_v63 = vmul.f32 %v372_v56, %v370_v52  ;;  %v435_v1 = vperm.slane %v981_v39, 3  ;;  %v484_v56 = vstv %s582_s12 }
  0xbd   :  { %v411_v5 = vadd.f32 %v410_v61, %v408_v59 }
  0xbe   :  { %v321_v4 = vpop.permute.xlu1 %320  ;;  %v290_v20 = vadd.f32 %v289_v9, %v276_v13  ;;  %v387_v9 = vmul.f32 %v386_v2, %v384_v0  ;;  %v447_v15 = vpop.permute.xlu0 %446  ;;  %v498_v0 = vstv %s584_s14 }
  0xbf   :  { %v324_v8 = vadd.f32 %v323_v60, %v321_v4  ;;  %v412_v17 = vmax.f32 %v411_v5, 0.0 }
  0xc0   :  { %v304_v31 = vadd.f32 %v303_v21, %v290_v20  ;;  %v414_v20 = vstv %s1001_s29 }
  0xc1   :  { %v327_v14 = vadd.f32 %v326_v7, %v324_v8  ;;  %v400_v7 = vstv %s992_s1 }
  0xc2   :  { %v318_v41 = vadd.f32 %v317_v26, %v304_v31  ;;  %v452_v26 = vstv %s1007_s6  ;;  %v477_v31 = vperm.slane %v981_v39, 6 }
  0xc3   :  { %v328_v24 = vmax.f32 %v327_v14, 0.0  ;;  %v433_v3 = vpop.permute.xlu2 %432  ;;  %v438_v14 = vstv %s998_s28 }
  0xc4   :  { %v436_v10 = vadd.f32 %v435_v1, %v433_v3 }
  0xc5   :  { %v331_v36 = vmul.f32 %v330_v27, %v328_v24  ;;  %v450_v24 = vadd.f32 %v449_v11, %v447_v15 }
  0xc6   :  { %v439_v23 = vadd.f32 %v438_v14, %v436_v10 }
  0xc7   :  { %v349_v30 = vpop.permute.xlu1 %348  ;;  %v332_v48 = vadd.f32 %v331_v36, %v318_v41  ;;  %v453_v19 = vadd.f32 %v452_v26, %v450_v24  ;;  %v442_v36 = vstv %s1014_s7 }
  0xc8   :  { %v352_v32 = vadd.f32 %v351_v22, %v349_v30  ;;  %v440_v35 = vmax.f32 %v439_v23, 0.0 }
  0xc9   :  { %v346_v58 = vadd.f32 %v345_v49, %v332_v48  ;;  %v470_v49 = vstv %s580_s11 }
  0xca   :  { %v355_v38 = vadd.f32 %v354_v29, %v352_v32  ;;  %v415_v29 = vmul.f32 %v414_v20, %v412_v17  ;;  %v463_v32 = vperm.slane %v981_v39, 5  ;;  %v443_v44 = vmul.f32 %v442_v36, %v440_v35 }
  0xcc   :  { %v356_v42 = vmax.f32 %v355_v38, 0.0  ;;  %v475_v33 = vpop.permute.xlu2 %474  ;;  %v466_v38 = vstv %s1016_s8 }
  0xcd   :  { %v478_v28 = vadd.f32 %v477_v31, %v475_v33 }
  0xce   :  { %v359_v51 = vmul.f32 %v358_v45, %v356_v42  ;;  %v480_v42 = vstv %s1019_s9  ;;  %v454_v45 = vmax.f32 %v453_v19, 0.0 }
  0xcf   :  { %v481_v48 = vadd.f32 %v480_v42, %v478_v28 }
  0xd0   :  { %v391_v55 = vpop.permute.xlu1 %390  ;;  %v360_v62 = vadd.f32 %v359_v51, %v346_v58  ;;  %v457_v52 = vmul.f32 %v456_v46, %v454_v45 }
  0xd1   :  { %v394_v57 = vadd.f32 %v393_v47, %v391_v55  ;;  %v482_v55 = vmax.f32 %v481_v48, 0.0 }
  0xd2   :  { %v374_v8 = vadd.f32 %v373_v63, %v360_v62 }
  0xd3   :  { %v397_v60 = vadd.f32 %v396_v54, %v394_v57  ;;  %v494_v57 = vstv %s583_s13  ;;  %v485_v62 = vmul.f32 %v484_v56, %v482_v55 }
  0xd4   :  { %v388_v21 = vadd.f32 %v387_v9, %v374_v8 }
  0xd5   :  { %v398_v4 = vmax.f32 %v397_v60, 0.0 }
  0xd7   :  { %v401_v16 = vmul.f32 %v400_v7, %v398_v4  ;;  %v502_v4 = vstv %s1039_s4 }
  0xd9   :  { %v419_v13 = vpop.permute.xlu1 %418  ;;  %v402_v27 = vadd.f32 %v401_v16, %v388_v21 }
  0xda   :  { %v422_v18 = vadd.f32 %v421_v6, %v419_v13 }
  0xdb   :  { %v416_v37 = vadd.f32 %v415_v29, %v402_v27 }
  0xdc   :  { %v425_v22 = vadd.f32 %v424_v12, %v422_v18 }
  0xde   :  { %v426_v30 = vmax.f32 %v425_v22, 0.0 }
  0xe0   :  { %v429_v34 = vmul.f32 %v428_v25, %v426_v30 }
  0xe2   :  { %v461_v40 = vpop.permute.xlu1 %460  ;;  %v430_v43 = vadd.f32 %v429_v34, %v416_v37 }
  0xe3   :  { %v464_v41 = vadd.f32 %v463_v32, %v461_v40 }
  0xe4   :  { %v444_v51 = vadd.f32 %v443_v44, %v430_v43 }
  0xe5   :  { %v467_v47 = vadd.f32 %v466_v38, %v464_v41 }
  0xe6   :  { %v458_v59 = vadd.f32 %v457_v52, %v444_v51 }
  0xe7   :  { %v468_v50 = vmax.f32 %v467_v47, 0.0 }
  0xe9   :  { %v471_v54 = vmul.f32 %v470_v49, %v468_v50 }
  0xeb   :  { %v489_v58 = vpop.permute.xlu1 %488  ;;  %v472_v61 = vadd.f32 %v471_v54, %v458_v59 }
  0xec   :  { %v492_v60 = vadd.f32 %v491_v53, %v489_v58 }
  0xed   :  { %v486_v3 = vadd.f32 %v485_v62, %v472_v61 }
  0xee   :  { %v495_v63 = vadd.f32 %v494_v57, %v492_v60 }
  0xf0   :  { %v496_v1 = vmax.f32 %v495_v63, 0.0 }
  0xf2   :  { %v499_v2 = vmul.f32 %v498_v0, %v496_v1 }
  0xf4   :  { %v500_v39 = vadd.f32 %v499_v2, %v486_v3 }
  0xf6   :  { %v503_v5 = vadd.f32 %v502_v4, %v500_v39 }
  0xf8   :  { %504 = vst [vmem:[#allocation8] sm:$0xff] %v503_v5 }
  0xf9   :  { %515 = dma.vmem_to_hbm [thread:$0]  %s511_s18, 128, %s513_s21, [#allocation4]  }
  0xfa   :  { %705 = dma.done.wait [#allocation4], 128  }
  0xfb   :  { %706 = vsyncadd [#allocation4], 4294967168 }
  0xfc   :  { %520 = vsyncpa [#allocation4], 1 }
  0xfd   :  { %521 = vsyncpa [#allocation5], 1 }
  0xfe   :  { %522 = vsyncpa [#allocation7], 1 }

</bundles_post_ra>
